<compile_context>
chip_gen: v7x
topology: tpu7x:2x2x1
jax: 0.10.0
libtpu: 0.0.40
codegen_flags: <defaults>
</compile_context>

<pallas_src>
import functools

import numpy as np

import jax
import jax.numpy as jnp
from jax.experimental import pallas as pl
from jax.experimental.pallas import tpu as pltpu

# Scaled-down channel counts (module uses 2048 / 512; same structure, exp=4).
C = 256      # "2048" backbone / head channels
MID = 64     # "512" bottleneck mid channels
BN_EPS = 1e-5


# ---------------------------------------------------------------------------
# 3x3 "same" padding masks (static, built on host): column k = kh*3 + kw is 1
# where the input pixel (h + kh - 1, w + kw - 1) lies inside the feature map.
# ---------------------------------------------------------------------------
def _conv3x3_pad_masks(H, W):
    HW = H * W
    m = np.zeros((HW, 9), np.float32)
    for r in range(HW):
        h, w = divmod(r, W)
        for dh in (-1, 0, 1):
            for dw in (-1, 0, 1):
                if 0 <= h + dh < H and 0 <= w + dw < W:
                    m[r, (dh + 1) * 3 + (dw + 1)] = 1.0
    return m


# ---------------------------------------------------------------------------
# The fused head kernel: one image per grid step.
# ---------------------------------------------------------------------------
def _bag_head_kernel(x_ref, mask_ref,
                     wg_ref, sg_ref, tg_ref,
                     w1_ref, s1_ref, t1_ref,
                     w2_ref, s2_ref, t2_ref,
                     w3_ref, s3_ref, t3_ref,
                     wr_ref, sr_ref, tr_ref,
                     glob_ref, part_ref,
                     *, H, W):
    HW = H * W
    f32 = jnp.float32
    bf16 = jnp.bfloat16
    mid = w1_ref.shape[1]

    # Block arrives channel-major (C, HW) straight from the NCHW feature map;
    # transpose once in VMEM (replaces the old XLA-level NCHW->NHWC HBM pass).
    x_t = x_ref[0].T                                   # (HW, C) f32 (residual)
    xb = x_t.astype(bf16)

    # ---- global branch: AdaptiveAvgPool2d -> 1x1 conv + BN + ReLU (fused) ----
    gmean = jnp.mean(x_t, axis=0, keepdims=True)       # (1, C) f32
    g = jnp.dot(gmean.astype(bf16), wg_ref[...], preferred_element_type=f32)
    glob_ref[0] = jnp.maximum(g * sg_ref[...] + tg_ref[...], 0.0
                              ).astype(glob_ref.dtype)

    # ---- part branch: Bottleneck(C, MID) ----
    # conv1 1x1 (no bias) + BN + ReLU
    y1 = jnp.dot(xb, w1_ref[...], preferred_element_type=f32)      # (HW, MID)
    y1 = jnp.maximum(y1 * s1_ref[...] + t1_ref[...], 0.0)

    # conv2 3x3 pad=1 + BN + ReLU, fused: 9 shifted taps accumulated on the
    # MXU.  pltpu.roll shifts the VMEM-resident tile; the precomputed mask
    # zeroes taps that fall into the zero padding.  Nothing goes back to HBM.
    masks = mask_ref[...]                              # (HW, 9) f32
    acc2 = jnp.zeros((HW, mid), f32)
    for dh in (-1, 0, 1):
        for dw in (-1, 0, 1):
            k = (dh + 1) * 3 + (dw + 1)                # == kh*3 + kw
            shift = (-(dh * W + dw)) % HW
            src = y1 if shift == 0 else pltpu.roll(y1, shift, axis=0)
            tap = src * masks[:, k:k + 1]
            acc2 = acc2 + jnp.dot(tap.astype(bf16), w2_ref[k],
                                  preferred_element_type=f32)
    y2 = jnp.maximum(acc2 * s2_ref[...] + t2_ref[...], 0.0)        # (HW, MID)

    # conv3 1x1 + BN, residual add (pre-ReLU), ReLU
    y3 = jnp.dot(y2.astype(bf16), w3_ref[...], preferred_element_type=f32)
    y3 = jnp.maximum(y3 * s3_ref[...] + t3_ref[...] + x_t, 0.0)    # (HW, C)

    # ---- AdaptiveMaxPool2d -> part_reduction (Linear + BN1d + ReLU), fused ----
    pmax = jnp.max(y3, axis=0, keepdims=True)                      # (1, C)
    p = jnp.dot(pmax.astype(bf16), wr_ref[...], preferred_element_type=f32)
    part_ref[0] = jnp.maximum(p * sr_ref[...] + tr_ref[...], 0.0
                              ).astype(part_ref.dtype)


# ---------------------------------------------------------------------------
# Parameter construction (deterministic, synthetic) + eval-mode BN folding
# ---------------------------------------------------------------------------
def _init_mat(key, fan_in, fan_out, scale=0.05):
    return scale * jax.random.normal(key, (fan_in, fan_out), jnp.float32)


def _init_vec(key, n, scale=0.05):
    return scale * jax.random.normal(key, (n,), jnp.float32)


def _init_bn(key, c):
    k1, k2, k3, k4 = jax.random.split(key, 4)
    gamma = 1.0 + 0.1 * jax.random.normal(k1, (c,), jnp.float32)
    beta = 0.1 * jax.random.normal(k2, (c,), jnp.float32)
    mean = 0.1 * jax.random.normal(k3, (c,), jnp.float32)
    var = jnp.abs(jax.random.normal(k4, (c,), jnp.float32)) + 0.5
    return gamma, beta, mean, var


def bn_fold(gamma, beta, mean, var, bias=None, eps=BN_EPS):
    """Fold eval-mode BatchNorm (and an optional preceding bias) into scale/shift."""
    s = gamma / jnp.sqrt(var + eps)
    t = beta - mean * s
    if bias is not None:
        t = t + bias * s
    return s, t


def make_params(key):
    ks = jax.random.split(key, 12)
    return {
        # global_reduction: Conv2d(C, C, 1, bias=True) + BatchNorm2d(C) + ReLU
        "g_red_w": _init_mat(ks[0], C, C),
        "g_red_b": _init_vec(ks[1], C),
        "g_red_bn": _init_bn(ks[2], C),
        # part = Bottleneck(C, MID): 1x1 C->MID, 3x3 MID->MID, 1x1 MID->C (+res)
        "conv1_w": _init_mat(ks[3], C, MID),
        "bn1": _init_bn(ks[4], MID),
        # conv2 layout: (kh*3+kw, cin, cout) == torch weight.permute(2,3,1,0)
        "conv2_w": 0.05 * jax.random.normal(ks[5], (9, MID, MID), jnp.float32),
        "bn2": _init_bn(ks[6], MID),
        "conv3_w": _init_mat(ks[7], MID, C),
        "bn3": _init_bn(ks[8], C),
        # part_reduction: Linear(C, C, bias=True) + BatchNorm1d(C) + ReLU
        "p_red_w": _init_mat(ks[9], C, C),
        "p_red_b": _init_vec(ks[10], C),
        "p_red_bn": _init_bn(ks[11], C),
    }


# ---------------------------------------------------------------------------
# Forward pass (eval mode): returns torch.cat(predict, dim=1) equivalent
# ---------------------------------------------------------------------------
def bag_reid_forward(feat_nchw, params):
    B, Ch, H, W = feat_nchw.shape
    assert Ch == C
    HW = H * W
    x = feat_nchw.reshape(B, Ch, HW)      # stays NCHW; transposed per-tile in VMEM

    bf16 = jnp.bfloat16
    sg, tg = bn_fold(*params["g_red_bn"], bias=params["g_red_b"])
    s1, t1 = bn_fold(*params["bn1"])
    s2, t2 = bn_fold(*params["bn2"])
    s3, t3 = bn_fold(*params["bn3"])
    sr, tr = bn_fold(*params["p_red_bn"], bias=params["p_red_b"])

    def row(v):
        return v.reshape(1, -1).astype(jnp.float32)

    masks = jnp.asarray(_conv3x3_pad_masks(H, W))      # (HW, 9) f32

    args = (
        x, masks,
        params["g_red_w"].astype(bf16), row(sg), row(tg),
        params["conv1_w"].astype(bf16), row(s1), row(t1),
        params["conv2_w"].astype(bf16), row(s2), row(t2),
        params["conv3_w"].astype(bf16), row(s3), row(t3),
        params["p_red_w"].astype(bf16), row(sr), row(tr),
    )

    const2 = lambda b: (0, 0)
    const3 = lambda b: (0, 0, 0)
    in_specs = [
        pl.BlockSpec((1, Ch, HW), lambda b: (b, 0, 0)),        # x: one image/step
        pl.BlockSpec((HW, 9), const2),                         # 3x3 pad masks
        pl.BlockSpec((Ch, Ch), const2),                        # global_reduction W
        pl.BlockSpec((1, Ch), const2), pl.BlockSpec((1, Ch), const2),
        pl.BlockSpec((Ch, MID), const2),                       # bottleneck conv1
        pl.BlockSpec((1, MID), const2), pl.BlockSpec((1, MID), const2),
        pl.BlockSpec((9, MID, MID), const3),                   # bottleneck conv2
        pl.BlockSpec((1, MID), const2), pl.BlockSpec((1, MID), const2),
        pl.BlockSpec((MID, Ch), const2),                       # bottleneck conv3
        pl.BlockSpec((1, Ch), const2), pl.BlockSpec((1, Ch), const2),
        pl.BlockSpec((Ch, Ch), const2),                        # part_reduction W
        pl.BlockSpec((1, Ch), const2), pl.BlockSpec((1, Ch), const2),
    ]

    glob_feat, part_feat = pl.pallas_call(
        functools.partial(_bag_head_kernel, H=H, W=W),
        grid=(B,),
        in_specs=in_specs,
        out_specs=[pl.BlockSpec((1, 1, Ch), lambda b: (b, 0, 0)),
                   pl.BlockSpec((1, 1, Ch), lambda b: (b, 0, 0))],
        out_shape=(jax.ShapeDtypeStruct((B, 1, Ch), jnp.float32),
                   jax.ShapeDtypeStruct((B, 1, Ch), jnp.float32)),
        compiler_params=pltpu.CompilerParams(
            dimension_semantics=("parallel",),
            vmem_limit_bytes=48 * 1024 * 1024),
    )(*args)

    glob_feat = glob_feat.reshape(B, Ch)
    part_feat = part_feat.reshape(B, Ch)
    # eval: predict = [global, part1, part2]; BatchDrop is identity in eval so
    # part2 == part1 -- computed once and reused (dedup, per review).
    return jnp.concatenate([glob_feat, part_feat, part_feat], axis=1)


# ---------------------------------------------------------------------------
# Pure-JAX f32 reference (same eval-mode math, independent formulation)
# ---------------------------------------------------------------------------
def _reference_forward(feat_nchw, params):
    B, Ch, H, W = feat_nchw.shape
    HW = H * W
    x = jnp.transpose(feat_nchw, (0, 2, 3, 1)).reshape(B, HW, Ch)

    sg, tg = bn_fold(*params["g_red_bn"], bias=params["g_red_b"])
    s1, t1 = bn_fold(*params["bn1"])
    s2, t2 = bn_fold(*params["bn2"])
    s3, t3 = bn_fold(*params["bn3"])
    sr, tr = bn_fold(*params["p_red_bn"], bias=params["p_red_b"])

    glob = jnp.mean(x, axis=1)
    gfeat = jnp.maximum(glob @ params["g_red_w"] * sg + tg, 0.0)

    y1 = jnp.maximum(x @ params["conv1_w"] * s1 + t1, 0.0).reshape(B, H, W, -1)
    yp = jnp.pad(y1, ((0, 0), (1, 1), (1, 1), (0, 0)))
    acc = jnp.zeros_like(y1)
    for kh in range(3):
        for kw in range(3):
            acc = acc + yp[:, kh:kh + H, kw:kw + W, :] @ params["conv2_w"][kh * 3 + kw]
    y2 = jnp.maximum(acc * s2 + t2, 0.0).reshape(B, HW, -1)
    y3 = jnp.maximum(y2 @ params["conv3_w"] * s3 + t3 + x, 0.0)
    pmax = jnp.max(y3, axis=1)
    pfeat = jnp.maximum(pmax @ params["p_red_w"] * sr + tr, 0.0)
    return jnp.concatenate([gfeat, pfeat, pfeat], axis=1)


if __name__ == "__main__":
    key = jax.random.PRNGKey(0)
    k_feat, k_params = jax.random.split(key)
    B, H, W = 2, 8, 8
    feat = jax.random.normal(k_feat, (B, C, H, W), jnp.float32)  # backbone output (NCHW)
    params = make_params(k_params)

    out = jax.jit(bag_reid_forward)(feat, params)
    out = jax.block_until_ready(out)
    assert out.shape == (B, 3 * C), out.shape
    assert bool(jnp.all(jnp.isfinite(out)))

    ref = _reference_forward(feat, params)
    rel_err = jnp.linalg.norm(out - ref) / jnp.linalg.norm(ref)
    assert float(rel_err) < 3e-2, float(rel_err)   # bf16-MXU vs f32 reference

    print("KERNEL_OK")
</pallas_src>

<mosaic_0001>
module attributes {stable_mosaic.version = 11 : i64} {
  func.func @_bag_head_kernel(%arg0: i32, %arg1: memref<1x256x64xf32, #tpu.memory_space<vmem>>, %arg2: memref<64x9xf32, #tpu.memory_space<vmem>>, %arg3: memref<256x256xbf16, #tpu.memory_space<vmem>>, %arg4: memref<1x256xf32, #tpu.memory_space<vmem>>, %arg5: memref<1x256xf32, #tpu.memory_space<vmem>>, %arg6: memref<256x64xbf16, #tpu.memory_space<vmem>>, %arg7: memref<1x64xf32, #tpu.memory_space<vmem>>, %arg8: memref<1x64xf32, #tpu.memory_space<vmem>>, %arg9: memref<9x64x64xbf16, #tpu.memory_space<vmem>>, %arg10: memref<1x64xf32, #tpu.memory_space<vmem>>, %arg11: memref<1x64xf32, #tpu.memory_space<vmem>>, %arg12: memref<64x256xbf16, #tpu.memory_space<vmem>>, %arg13: memref<1x256xf32, #tpu.memory_space<vmem>>, %arg14: memref<1x256xf32, #tpu.memory_space<vmem>>, %arg15: memref<256x256xbf16, #tpu.memory_space<vmem>>, %arg16: memref<1x256xf32, #tpu.memory_space<vmem>>, %arg17: memref<1x256xf32, #tpu.memory_space<vmem>>, %arg18: memref<1x1x256xf32, #tpu.memory_space<vmem>>, %arg19: memref<1x1x256xf32, #tpu.memory_space<vmem>>) attributes {dimension_semantics = [#tpu.dimension_semantics<parallel>], iteration_bounds = array<i64: 2>, scalar_prefetch = 0 : i64, scratch_operands = 0 : i64, tpu.core_type = #tpu.core_type<tc>, window_params = [{transform_indices = @transform_0, window_bounds = array<i64: 1, 256, 64>}, {pipeline_mode = #tpu.pipeline_mode<synchronous>, transform_indices = @transform_1, window_bounds = array<i64: 64, 9>}, {pipeline_mode = #tpu.pipeline_mode<synchronous>, transform_indices = @transform_2, window_bounds = array<i64: 256, 256>}, {pipeline_mode = #tpu.pipeline_mode<synchronous>, transform_indices = @transform_3, window_bounds = array<i64: 1, 256>}, {pipeline_mode = #tpu.pipeline_mode<synchronous>, transform_indices = @transform_4, window_bounds = array<i64: 1, 256>}, {pipeline_mode = #tpu.pipeline_mode<synchronous>, transform_indices = @transform_5, window_bounds = array<i64: 256, 64>}, {pipeline_mode = #tpu.pipeline_mode<synchronous>, transform_indices = @transform_6, window_bounds = array<i64: 1, 64>}, {pipeline_mode = #tpu.pipeline_mode<synchronous>, transform_indices = @transform_7, window_bounds = array<i64: 1, 64>}, {pipeline_mode = #tpu.pipeline_mode<synchronous>, transform_indices = @transform_8, window_bounds = array<i64: 9, 64, 64>}, {pipeline_mode = #tpu.pipeline_mode<synchronous>, transform_indices = @transform_9, window_bounds = array<i64: 1, 64>}, {pipeline_mode = #tpu.pipeline_mode<synchronous>, transform_indices = @transform_10, window_bounds = array<i64: 1, 64>}, {pipeline_mode = #tpu.pipeline_mode<synchronous>, transform_indices = @transform_11, window_bounds = array<i64: 64, 256>}, {pipeline_mode = #tpu.pipeline_mode<synchronous>, transform_indices = @transform_12, window_bounds = array<i64: 1, 256>}, {pipeline_mode = #tpu.pipeline_mode<synchronous>, transform_indices = @transform_13, window_bounds = array<i64: 1, 256>}, {pipeline_mode = #tpu.pipeline_mode<synchronous>, transform_indices = @transform_14, window_bounds = array<i64: 256, 256>}, {pipeline_mode = #tpu.pipeline_mode<synchronous>, transform_indices = @transform_15, window_bounds = array<i64: 1, 256>}, {pipeline_mode = #tpu.pipeline_mode<synchronous>, transform_indices = @transform_16, window_bounds = array<i64: 1, 256>}, {transform_indices = @transform_17, window_bounds = array<i64: 1, 1, 256>}, {transform_indices = @transform_18, window_bounds = array<i64: 1, 1, 256>}]} {
    %c0 = arith.constant 0 : index
    %c0_0 = arith.constant 0 : index
    %c0_1 = arith.constant 0 : index
    %0 = vector.load %arg1[%c0, %c0_0, %c0_1] : memref<1x256x64xf32, #tpu.memory_space<vmem>>, vector<1x256x64xf32>
    %1 = vector.shape_cast %0 : vector<1x256x64xf32> to vector<256x64xf32>
    %2 = tpu.transpose %1, [1, 0] : vector<256x64xf32> -> vector<64x256xf32>
    %3 = arith.truncf %2 : vector<64x256xf32> to vector<64x256xbf16>
    %cst = arith.constant dense<0.000000e+00> : vector<256xf32>
    %4 = vector.multi_reduction <add>, %2, %cst [0] : vector<64x256xf32> to vector<256xf32>
    %5 = vector.shape_cast %4 : vector<256xf32> to vector<1x256xf32>
    %cst_2 = arith.constant 6.400000e+01 : f32
    %6 = vector.broadcast %cst_2 : f32 to vector<1x256xf32>
    %7 = arith.divf %5, %6 : vector<1x256xf32>
    %8 = arith.truncf %7 : vector<1x256xf32> to vector<1x256xbf16>
    %c0_3 = arith.constant 0 : index
    %c0_4 = arith.constant 0 : index
    %9 = vector.load %arg3[%c0_3, %c0_4] : memref<256x256xbf16, #tpu.memory_space<vmem>>, vector<256x256xbf16>
    %cst_5 = arith.constant dense<0.000000e+00> : vector<1x256xf32>
    %10 = tpu.matmul %8, %9, %cst_5 {dimension_numbers = #tpu.dot_dimension_numbers<[1], [0], [0], [1], [0, 0, 1, 1], [], []>} : vector<1x256xbf16>, vector<256x256xbf16>, vector<1x256xf32> -> vector<1x256xf32>
    %c0_6 = arith.constant 0 : index
    %c0_7 = arith.constant 0 : index
    %11 = vector.load %arg4[%c0_6, %c0_7] : memref<1x256xf32, #tpu.memory_space<vmem>>, vector<1x256xf32>
    %12 = arith.mulf %10, %11 : vector<1x256xf32>
    %c0_8 = arith.constant 0 : index
    %c0_9 = arith.constant 0 : index
    %13 = vector.load %arg5[%c0_8, %c0_9] : memref<1x256xf32, #tpu.memory_space<vmem>>, vector<1x256xf32>
    %14 = arith.addf %12, %13 : vector<1x256xf32>
    %cst_10 = arith.constant 0.000000e+00 : f32
    %15 = vector.broadcast %cst_10 : f32 to vector<1x256xf32>
    %16 = arith.maximumf %14, %15 : vector<1x256xf32>
    %c0_11 = arith.constant 0 : index
    %c0_12 = arith.constant 0 : index
    %c0_13 = arith.constant 0 : index
    %17 = vector.load %arg18[%c0_11, %c0_12, %c0_13] : memref<1x1x256xf32, #tpu.memory_space<vmem>>, vector<1x1x256xf32>
    %18 = vector.shape_cast %17 : vector<1x1x256xf32> to vector<1x256xf32>
    %19 = vector.shape_cast %16 : vector<1x256xf32> to vector<1x1x256xf32>
    tpu.vector_store %arg18[%c0_11, %c0_12, %c0_13], %19 {strides = array<i32>} : memref<1x1x256xf32, #tpu.memory_space<vmem>>, vector<1x1x256xf32>,
    %c0_14 = arith.constant 0 : index
    %c0_15 = arith.constant 0 : index
    %20 = vector.load %arg6[%c0_14, %c0_15] : memref<256x64xbf16, #tpu.memory_space<vmem>>, vector<256x64xbf16>
    %cst_16 = arith.constant dense<0.000000e+00> : vector<64x64xf32>
    %21 = tpu.matmul %3, %20, %cst_16 {dimension_numbers = #tpu.dot_dimension_numbers<[1], [0], [0], [1], [0, 0, 1, 1], [], []>} : vector<64x256xbf16>, vector<256x64xbf16>, vector<64x64xf32> -> vector<64x64xf32>
    %c0_17 = arith.constant 0 : index
    %c0_18 = arith.constant 0 : index
    %22 = vector.load %arg7[%c0_17, %c0_18] : memref<1x64xf32, #tpu.memory_space<vmem>>, vector<1x64xf32>
    %23 = vector.broadcast %22 : vector<1x64xf32> to vector<64x64xf32>
    %24 = arith.mulf %21, %23 : vector<64x64xf32>
    %c0_19 = arith.constant 0 : index
    %c0_20 = arith.constant 0 : index
    %25 = vector.load %arg8[%c0_19, %c0_20] : memref<1x64xf32, #tpu.memory_space<vmem>>, vector<1x64xf32>
    %26 = vector.broadcast %25 : vector<1x64xf32> to vector<64x64xf32>
    %27 = arith.addf %24, %26 : vector<64x64xf32>
    %cst_21 = arith.constant 0.000000e+00 : f32
    %28 = vector.broadcast %cst_21 : f32 to vector<64x64xf32>
    %29 = arith.maximumf %27, %28 : vector<64x64xf32>
    %c0_22 = arith.constant 0 : index
    %c0_23 = arith.constant 0 : index
    %30 = vector.load %arg2[%c0_22, %c0_23] : memref<64x9xf32, #tpu.memory_space<vmem>>, vector<64x9xf32>
    %cst_24 = arith.constant 0.000000e+00 : f32
    %31 = vector.broadcast %cst_24 : f32 to vector<64x64xf32>
    %c9_i32 = arith.constant 9 : i32
    %32 = tpu.dynamic_rotate %29 by %c9_i32 dim 0 : vector<64x64xf32>, i32 -> vector<64x64xf32>
    %33 = vector.extract_strided_slice %30 {offsets = [0, 0], sizes = [64, 1], strides = [1, 1]} : vector<64x9xf32> to vector<64x1xf32>
    %34 = vector.broadcast %33 : vector<64x1xf32> to vector<64x64xf32>
    %35 = arith.mulf %32, %34 : vector<64x64xf32>
    %36 = arith.truncf %35 : vector<64x64xf32> to vector<64x64xbf16>
    %c0_25 = arith.constant 0 : index
    %c0_26 = arith.constant 0 : index
    %c0_27 = arith.constant 0 : index
    %37 = vector.load %arg9[%c0_25, %c0_26, %c0_27] : memref<9x64x64xbf16, #tpu.memory_space<vmem>>, vector<1x64x64xbf16>
    %38 = vector.shape_cast %37 : vector<1x64x64xbf16> to vector<64x64xbf16>
    %cst_28 = arith.constant dense<0.000000e+00> : vector<64x64xf32>
    %39 = tpu.matmul %36, %38, %cst_28 {dimension_numbers = #tpu.dot_dimension_numbers<[1], [0], [0], [1], [0, 0, 1, 1], [], []>} : vector<64x64xbf16>, vector<64x64xbf16>, vector<64x64xf32> -> vector<64x64xf32>
    %40 = arith.addf %31, %39 : vector<64x64xf32>
    %c8_i32 = arith.constant 8 : i32
    %41 = tpu.dynamic_rotate %29 by %c8_i32 dim 0 : vector<64x64xf32>, i32 -> vector<64x64xf32>
    %42 = vector.extract_strided_slice %30 {offsets = [0, 1], sizes = [64, 1], strides = [1, 1]} : vector<64x9xf32> to vector<64x1xf32>
    %43 = vector.broadcast %42 : vector<64x1xf32> to vector<64x64xf32>
    %44 = arith.mulf %41, %43 : vector<64x64xf32>
    %45 = arith.truncf %44 : vector<64x64xf32> to vector<64x64xbf16>
    %c1 = arith.constant 1 : index
    %c0_29 = arith.constant 0 : index
    %c0_30 = arith.constant 0 : index
    %46 = vector.load %arg9[%c1, %c0_29, %c0_30] : memref<9x64x64xbf16, #tpu.memory_space<vmem>>, vector<1x64x64xbf16>
    %47 = vector.shape_cast %46 : vector<1x64x64xbf16> to vector<64x64xbf16>
    %cst_31 = arith.constant dense<0.000000e+00> : vector<64x64xf32>
    %48 = tpu.matmul %45, %47, %cst_31 {dimension_numbers = #tpu.dot_dimension_numbers<[1], [0], [0], [1], [0, 0, 1, 1], [], []>} : vector<64x64xbf16>, vector<64x64xbf16>, vector<64x64xf32> -> vector<64x64xf32>
    %49 = arith.addf %40, %48 : vector<64x64xf32>
    %c7_i32 = arith.constant 7 : i32
    %50 = tpu.dynamic_rotate %29 by %c7_i32 dim 0 : vector<64x64xf32>, i32 -> vector<64x64xf32>
    %51 = vector.extract_strided_slice %30 {offsets = [0, 2], sizes = [64, 1], strides = [1, 1]} : vector<64x9xf32> to vector<64x1xf32>
    %52 = vector.broadcast %51 : vector<64x1xf32> to vector<64x64xf32>
    %53 = arith.mulf %50, %52 : vector<64x64xf32>
    %54 = arith.truncf %53 : vector<64x64xf32> to vector<64x64xbf16>
    %c2 = arith.constant 2 : index
    %c0_32 = arith.constant 0 : index
    %c0_33 = arith.constant 0 : index
    %55 = vector.load %arg9[%c2, %c0_32, %c0_33] : memref<9x64x64xbf16, #tpu.memory_space<vmem>>, vector<1x64x64xbf16>
    %56 = vector.shape_cast %55 : vector<1x64x64xbf16> to vector<64x64xbf16>
    %cst_34 = arith.constant dense<0.000000e+00> : vector<64x64xf32>
    %57 = tpu.matmul %54, %56, %cst_34 {dimension_numbers = #tpu.dot_dimension_numbers<[1], [0], [0], [1], [0, 0, 1, 1], [], []>} : vector<64x64xbf16>, vector<64x64xbf16>, vector<64x64xf32> -> vector<64x64xf32>
    %58 = arith.addf %49, %57 : vector<64x64xf32>
    %c1_i32 = arith.constant 1 : i32
    %59 = tpu.dynamic_rotate %29 by %c1_i32 dim 0 : vector<64x64xf32>, i32 -> vector<64x64xf32>
    %60 = vector.extract_strided_slice %30 {offsets = [0, 3], sizes = [64, 1], strides = [1, 1]} : vector<64x9xf32> to vector<64x1xf32>
    %61 = vector.broadcast %60 : vector<64x1xf32> to vector<64x64xf32>
    %62 = arith.mulf %59, %61 : vector<64x64xf32>
    %63 = arith.truncf %62 : vector<64x64xf32> to vector<64x64xbf16>
    %c3 = arith.constant 3 : index
    %c0_35 = arith.constant 0 : index
    %c0_36 = arith.constant 0 : index
    %64 = vector.load %arg9[%c3, %c0_35, %c0_36] : memref<9x64x64xbf16, #tpu.memory_space<vmem>>, vector<1x64x64xbf16>
    %65 = vector.shape_cast %64 : vector<1x64x64xbf16> to vector<64x64xbf16>
    %cst_37 = arith.constant dense<0.000000e+00> : vector<64x64xf32>
    %66 = tpu.matmul %63, %65, %cst_37 {dimension_numbers = #tpu.dot_dimension_numbers<[1], [0], [0], [1], [0, 0, 1, 1], [], []>} : vector<64x64xbf16>, vector<64x64xbf16>, vector<64x64xf32> -> vector<64x64xf32>
    %67 = arith.addf %58, %66 : vector<64x64xf32>
    %68 = vector.extract_strided_slice %30 {offsets = [0, 4], sizes = [64, 1], strides = [1, 1]} : vector<64x9xf32> to vector<64x1xf32>
    %69 = vector.broadcast %68 : vector<64x1xf32> to vector<64x64xf32>
    %70 = arith.mulf %29, %69 : vector<64x64xf32>
    %71 = arith.truncf %70 : vector<64x64xf32> to vector<64x64xbf16>
    %c4 = arith.constant 4 : index
    %c0_38 = arith.constant 0 : index
    %c0_39 = arith.constant 0 : index
    %72 = vector.load %arg9[%c4, %c0_38, %c0_39] : memref<9x64x64xbf16, #tpu.memory_space<vmem>>, vector<1x64x64xbf16>
    %73 = vector.shape_cast %72 : vector<1x64x64xbf16> to vector<64x64xbf16>
    %cst_40 = arith.constant dense<0.000000e+00> : vector<64x64xf32>
    %74 = tpu.matmul %71, %73, %cst_40 {dimension_numbers = #tpu.dot_dimension_numbers<[1], [0], [0], [1], [0, 0, 1, 1], [], []>} : vector<64x64xbf16>, vector<64x64xbf16>, vector<64x64xf32> -> vector<64x64xf32>
    %75 = arith.addf %67, %74 : vector<64x64xf32>
    %c63_i32 = arith.constant 63 : i32
    %76 = tpu.dynamic_rotate %29 by %c63_i32 dim 0 : vector<64x64xf32>, i32 -> vector<64x64xf32>
    %77 = vector.extract_strided_slice %30 {offsets = [0, 5], sizes = [64, 1], strides = [1, 1]} : vector<64x9xf32> to vector<64x1xf32>
    %78 = vector.broadcast %77 : vector<64x1xf32> to vector<64x64xf32>
    %79 = arith.mulf %76, %78 : vector<64x64xf32>
    %80 = arith.truncf %79 : vector<64x64xf32> to vector<64x64xbf16>
    %c5 = arith.constant 5 : index
    %c0_41 = arith.constant 0 : index
    %c0_42 = arith.constant 0 : index
    %81 = vector.load %arg9[%c5, %c0_41, %c0_42] : memref<9x64x64xbf16, #tpu.memory_space<vmem>>, vector<1x64x64xbf16>
    %82 = vector.shape_cast %81 : vector<1x64x64xbf16> to vector<64x64xbf16>
    %cst_43 = arith.constant dense<0.000000e+00> : vector<64x64xf32>
    %83 = tpu.matmul %80, %82, %cst_43 {dimension_numbers = #tpu.dot_dimension_numbers<[1], [0], [0], [1], [0, 0, 1, 1], [], []>} : vector<64x64xbf16>, vector<64x64xbf16>, vector<64x64xf32> -> vector<64x64xf32>
    %84 = arith.addf %75, %83 : vector<64x64xf32>
    %c57_i32 = arith.constant 57 : i32
    %85 = tpu.dynamic_rotate %29 by %c57_i32 dim 0 : vector<64x64xf32>, i32 -> vector<64x64xf32>
    %86 = vector.extract_strided_slice %30 {offsets = [0, 6], sizes = [64, 1], strides = [1, 1]} : vector<64x9xf32> to vector<64x1xf32>
    %87 = vector.broadcast %86 : vector<64x1xf32> to vector<64x64xf32>
    %88 = arith.mulf %85, %87 : vector<64x64xf32>
    %89 = arith.truncf %88 : vector<64x64xf32> to vector<64x64xbf16>
    %c6 = arith.constant 6 : index
    %c0_44 = arith.constant 0 : index
    %c0_45 = arith.constant 0 : index
    %90 = vector.load %arg9[%c6, %c0_44, %c0_45] : memref<9x64x64xbf16, #tpu.memory_space<vmem>>, vector<1x64x64xbf16>
    %91 = vector.shape_cast %90 : vector<1x64x64xbf16> to vector<64x64xbf16>
    %cst_46 = arith.constant dense<0.000000e+00> : vector<64x64xf32>
    %92 = tpu.matmul %89, %91, %cst_46 {dimension_numbers = #tpu.dot_dimension_numbers<[1], [0], [0], [1], [0, 0, 1, 1], [], []>} : vector<64x64xbf16>, vector<64x64xbf16>, vector<64x64xf32> -> vector<64x64xf32>
    %93 = arith.addf %84, %92 : vector<64x64xf32>
    %c56_i32 = arith.constant 56 : i32
    %94 = tpu.dynamic_rotate %29 by %c56_i32 dim 0 : vector<64x64xf32>, i32 -> vector<64x64xf32>
    %95 = vector.extract_strided_slice %30 {offsets = [0, 7], sizes = [64, 1], strides = [1, 1]} : vector<64x9xf32> to vector<64x1xf32>
    %96 = vector.broadcast %95 : vector<64x1xf32> to vector<64x64xf32>
    %97 = arith.mulf %94, %96 : vector<64x64xf32>
    %98 = arith.truncf %97 : vector<64x64xf32> to vector<64x64xbf16>
    %c7 = arith.constant 7 : index
    %c0_47 = arith.constant 0 : index
    %c0_48 = arith.constant 0 : index
    %99 = vector.load %arg9[%c7, %c0_47, %c0_48] : memref<9x64x64xbf16, #tpu.memory_space<vmem>>, vector<1x64x64xbf16>
    %100 = vector.shape_cast %99 : vector<1x64x64xbf16> to vector<64x64xbf16>
    %cst_49 = arith.constant dense<0.000000e+00> : vector<64x64xf32>
    %101 = tpu.matmul %98, %100, %cst_49 {dimension_numbers = #tpu.dot_dimension_numbers<[1], [0], [0], [1], [0, 0, 1, 1], [], []>} : vector<64x64xbf16>, vector<64x64xbf16>, vector<64x64xf32> -> vector<64x64xf32>
    %102 = arith.addf %93, %101 : vector<64x64xf32>
    %c55_i32 = arith.constant 55 : i32
    %103 = tpu.dynamic_rotate %29 by %c55_i32 dim 0 : vector<64x64xf32>, i32 -> vector<64x64xf32>
    %104 = vector.extract_strided_slice %30 {offsets = [0, 8], sizes = [64, 1], strides = [1, 1]} : vector<64x9xf32> to vector<64x1xf32>
    %105 = vector.broadcast %104 : vector<64x1xf32> to vector<64x64xf32>
    %106 = arith.mulf %103, %105 : vector<64x64xf32>
    %107 = arith.truncf %106 : vector<64x64xf32> to vector<64x64xbf16>
    %c8 = arith.constant 8 : index
    %c0_50 = arith.constant 0 : index
    %c0_51 = arith.constant 0 : index
    %108 = vector.load %arg9[%c8, %c0_50, %c0_51] : memref<9x64x64xbf16, #tpu.memory_space<vmem>>, vector<1x64x64xbf16>
    %109 = vector.shape_cast %108 : vector<1x64x64xbf16> to vector<64x64xbf16>
    %cst_52 = arith.constant dense<0.000000e+00> : vector<64x64xf32>
    %110 = tpu.matmul %107, %109, %cst_52 {dimension_numbers = #tpu.dot_dimension_numbers<[1], [0], [0], [1], [0, 0, 1, 1], [], []>} : vector<64x64xbf16>, vector<64x64xbf16>, vector<64x64xf32> -> vector<64x64xf32>
    %111 = arith.addf %102, %110 : vector<64x64xf32>
    %c0_53 = arith.constant 0 : index
    %c0_54 = arith.constant 0 : index
    %112 = vector.load %arg10[%c0_53, %c0_54] : memref<1x64xf32, #tpu.memory_space<vmem>>, vector<1x64xf32>
    %113 = vector.broadcast %112 : vector<1x64xf32> to vector<64x64xf32>
    %114 = arith.mulf %111, %113 : vector<64x64xf32>
    %c0_55 = arith.constant 0 : index
    %c0_56 = arith.constant 0 : index
    %115 = vector.load %arg11[%c0_55, %c0_56] : memref<1x64xf32, #tpu.memory_space<vmem>>, vector<1x64xf32>
    %116 = vector.broadcast %115 : vector<1x64xf32> to vector<64x64xf32>
    %117 = arith.addf %114, %116 : vector<64x64xf32>
    %cst_57 = arith.constant 0.000000e+00 : f32
    %118 = vector.broadcast %cst_57 : f32 to vector<64x64xf32>
    %119 = arith.maximumf %117, %118 : vector<64x64xf32>
    %120 = arith.truncf %119 : vector<64x64xf32> to vector<64x64xbf16>
    %c0_58 = arith.constant 0 : index
    %c0_59 = arith.constant 0 : index
    %121 = vector.load %arg12[%c0_58, %c0_59] : memref<64x256xbf16, #tpu.memory_space<vmem>>, vector<64x256xbf16>
    %cst_60 = arith.constant dense<0.000000e+00> : vector<64x256xf32>
    %122 = tpu.matmul %120, %121, %cst_60 {dimension_numbers = #tpu.dot_dimension_numbers<[1], [0], [0], [1], [0, 0, 1, 1], [], []>} : vector<64x64xbf16>, vector<64x256xbf16>, vector<64x256xf32> -> vector<64x256xf32>
    %c0_61 = arith.constant 0 : index
    %c0_62 = arith.constant 0 : index
    %123 = vector.load %arg13[%c0_61, %c0_62] : memref<1x256xf32, #tpu.memory_space<vmem>>, vector<1x256xf32>
    %124 = vector.broadcast %123 : vector<1x256xf32> to vector<64x256xf32>
    %125 = arith.mulf %122, %124 : vector<64x256xf32>
    %c0_63 = arith.constant 0 : index
    %c0_64 = arith.constant 0 : index
    %126 = vector.load %arg14[%c0_63, %c0_64] : memref<1x256xf32, #tpu.memory_space<vmem>>, vector<1x256xf32>
    %127 = vector.broadcast %126 : vector<1x256xf32> to vector<64x256xf32>
    %128 = arith.addf %125, %127 : vector<64x256xf32>
    %129 = arith.addf %128, %2 : vector<64x256xf32>
    %cst_65 = arith.constant 0.000000e+00 : f32
    %130 = vector.broadcast %cst_65 : f32 to vector<64x256xf32>
    %131 = arith.maximumf %129, %130 : vector<64x256xf32>
    %cst_66 = arith.constant dense<0xFF800000> : vector<256xf32>
    %132 = vector.multi_reduction <maximumf>, %131, %cst_66 [0] : vector<64x256xf32> to vector<256xf32>
    %133 = vector.shape_cast %132 : vector<256xf32> to vector<1x256xf32>
    %134 = arith.truncf %133 : vector<1x256xf32> to vector<1x256xbf16>
    %c0_67 = arith.constant 0 : index
    %c0_68 = arith.constant 0 : index
    %135 = vector.load %arg15[%c0_67, %c0_68] : memref<256x256xbf16, #tpu.memory_space<vmem>>, vector<256x256xbf16>
    %cst_69 = arith.constant dense<0.000000e+00> : vector<1x256xf32>
    %136 = tpu.matmul %134, %135, %cst_69 {dimension_numbers = #tpu.dot_dimension_numbers<[1], [0], [0], [1], [0, 0, 1, 1], [], []>} : vector<1x256xbf16>, vector<256x256xbf16>, vector<1x256xf32> -> vector<1x256xf32>
    %c0_70 = arith.constant 0 : index
    %c0_71 = arith.constant 0 : index
    %137 = vector.load %arg16[%c0_70, %c0_71] : memref<1x256xf32, #tpu.memory_space<vmem>>, vector<1x256xf32>
    %138 = arith.mulf %136, %137 : vector<1x256xf32>
    %c0_72 = arith.constant 0 : index
    %c0_73 = arith.constant 0 : index
    %139 = vector.load %arg17[%c0_72, %c0_73] : memref<1x256xf32, #tpu.memory_space<vmem>>, vector<1x256xf32>
    %140 = arith.addf %138, %139 : vector<1x256xf32>
    %cst_74 = arith.constant 0.000000e+00 : f32
    %141 = vector.broadcast %cst_74 : f32 to vector<1x256xf32>
    %142 = arith.maximumf %140, %141 : vector<1x256xf32>
    %c0_75 = arith.constant 0 : index
    %c0_76 = arith.constant 0 : index
    %c0_77 = arith.constant 0 : index
    %143 = vector.load %arg19[%c0_75, %c0_76, %c0_77] : memref<1x1x256xf32, #tpu.memory_space<vmem>>, vector<1x1x256xf32>
    %144 = vector.shape_cast %143 : vector<1x1x256xf32> to vector<1x256xf32>
    %145 = vector.shape_cast %142 : vector<1x256xf32> to vector<1x1x256xf32>
    tpu.vector_store %arg19[%c0_75, %c0_76, %c0_77], %145 {strides = array<i32>} : memref<1x1x256xf32, #tpu.memory_space<vmem>>, vector<1x1x256xf32>,
    return
  }
  func.func @transform_0(%arg0: i32) -> (i32, i32, i32) {
    %c0_i32 = arith.constant 0 : i32
    %c0_i32_0 = arith.constant 0 : i32
    %c0_i32_1 = arith.constant 0 : i32
    return %arg0, %c0_i32, %c0_i32_0 : i32, i32, i32
  }
  func.func @transform_1(%arg0: i32) -> (i32, i32) {
    %c0_i32 = arith.constant 0 : i32
    %c0_i32_0 = arith.constant 0 : i32
    %c0_i32_1 = arith.constant 0 : i32
    return %c0_i32, %c0_i32_0 : i32, i32
  }
  func.func @transform_2(%arg0: i32) -> (i32, i32) {
    %c0_i32 = arith.constant 0 : i32
    %c0_i32_0 = arith.constant 0 : i32
    %c0_i32_1 = arith.constant 0 : i32
    return %c0_i32, %c0_i32_0 : i32, i32
  }
  func.func @transform_3(%arg0: i32) -> (i32, i32) {
    %c0_i32 = arith.constant 0 : i32
    %c0_i32_0 = arith.constant 0 : i32
    %c0_i32_1 = arith.constant 0 : i32
    return %c0_i32, %c0_i32_0 : i32, i32
  }
  func.func @transform_4(%arg0: i32) -> (i32, i32) {
    %c0_i32 = arith.constant 0 : i32
    %c0_i32_0 = arith.constant 0 : i32
    %c0_i32_1 = arith.constant 0 : i32
    return %c0_i32, %c0_i32_0 : i32, i32
  }
  func.func @transform_5(%arg0: i32) -> (i32, i32) {
    %c0_i32 = arith.constant 0 : i32
    %c0_i32_0 = arith.constant 0 : i32
    %c0_i32_1 = arith.constant 0 : i32
    return %c0_i32, %c0_i32_0 : i32, i32
  }
  func.func @transform_6(%arg0: i32) -> (i32, i32) {
    %c0_i32 = arith.constant 0 : i32
    %c0_i32_0 = arith.constant 0 : i32
    %c0_i32_1 = arith.constant 0 : i32
    return %c0_i32, %c0_i32_0 : i32, i32
  }
  func.func @transform_7(%arg0: i32) -> (i32, i32) {
    %c0_i32 = arith.constant 0 : i32
    %c0_i32_0 = arith.constant 0 : i32
    %c0_i32_1 = arith.constant 0 : i32
    return %c0_i32, %c0_i32_0 : i32, i32
  }
  func.func @transform_8(%arg0: i32) -> (i32, i32, i32) {
    %c0_i32 = arith.constant 0 : i32
    %c0_i32_0 = arith.constant 0 : i32
    %c0_i32_1 = arith.constant 0 : i32
    %c0_i32_2 = arith.constant 0 : i32
    return %c0_i32, %c0_i32_0, %c0_i32_1 : i32, i32, i32
  }
  func.func @transform_9(%arg0: i32) -> (i32, i32) {
    %c0_i32 = arith.constant 0 : i32
    %c0_i32_0 = arith.constant 0 : i32
    %c0_i32_1 = arith.constant 0 : i32
    return %c0_i32, %c0_i32_0 : i32, i32
  }
  func.func @transform_10(%arg0: i32) -> (i32, i32) {
    %c0_i32 = arith.constant 0 : i32
    %c0_i32_0 = arith.constant 0 : i32
    %c0_i32_1 = arith.constant 0 : i32
    return %c0_i32, %c0_i32_0 : i32, i32
  }
  func.func @transform_11(%arg0: i32) -> (i32, i32) {
    %c0_i32 = arith.constant 0 : i32
    %c0_i32_0 = arith.constant 0 : i32
    %c0_i32_1 = arith.constant 0 : i32
    return %c0_i32, %c0_i32_0 : i32, i32
  }
  func.func @transform_12(%arg0: i32) -> (i32, i32) {
    %c0_i32 = arith.constant 0 : i32
    %c0_i32_0 = arith.constant 0 : i32
    %c0_i32_1 = arith.constant 0 : i32
    return %c0_i32, %c0_i32_0 : i32, i32
  }
  func.func @transform_13(%arg0: i32) -> (i32, i32) {
    %c0_i32 = arith.constant 0 : i32
    %c0_i32_0 = arith.constant 0 : i32
    %c0_i32_1 = arith.constant 0 : i32
    return %c0_i32, %c0_i32_0 : i32, i32
  }
  func.func @transform_14(%arg0: i32) -> (i32, i32) {
    %c0_i32 = arith.constant 0 : i32
    %c0_i32_0 = arith.constant 0 : i32
    %c0_i32_1 = arith.constant 0 : i32
    return %c0_i32, %c0_i32_0 : i32, i32
  }
  func.func @transform_15(%arg0: i32) -> (i32, i32) {
    %c0_i32 = arith.constant 0 : i32
    %c0_i32_0 = arith.constant 0 : i32
    %c0_i32_1 = arith.constant 0 : i32
    return %c0_i32, %c0_i32_0 : i32, i32
  }
  func.func @transform_16(%arg0: i32) -> (i32, i32) {
    %c0_i32 = arith.constant 0 : i32
    %c0_i32_0 = arith.constant 0 : i32
    %c0_i32_1 = arith.constant 0 : i32
    return %c0_i32, %c0_i32_0 : i32, i32
  }
  func.func @transform_17(%arg0: i32) -> (i32, i32, i32) {
    %c0_i32 = arith.constant 0 : i32
    %c0_i32_0 = arith.constant 0 : i32
    %c0_i32_1 = arith.constant 0 : i32
    return %arg0, %c0_i32, %c0_i32_0 : i32, i32, i32
  }
  func.func @transform_18(%arg0: i32) -> (i32, i32, i32) {
    %c0_i32 = arith.constant 0 : i32
    %c0_i32_0 = arith.constant 0 : i32
    %c0_i32_1 = arith.constant 0 : i32
    return %arg0, %c0_i32, %c0_i32_0 : i32, i32, i32
  }
}

</mosaic_0001>

<bundles_post_ra>
// kernel: bag_reid_forward.1
= control target key start
LH: loop header
LB: loop body
LE: loop exit
PB: predicated region body
PF: predicated region fallthrough
CT: control target
= control target key end

     0   :  { %s4278_s27 = smov 0   ;;  %s5731_s0 = inlined_call_operand.vmem [shape: f32[2,256,64], index: 0, kind: input, shape index: {}]   ;;  %s5732_s1 = inlined_call_operand.vmem [shape: f32[64,9], index: 1, kind: input, shape index: {}]   ;;  %s5733_s2 = inlined_call_operand.vmem [shape: bf16[256,256], index: 2, kind: input, shape index: {}]   ;;  %s5734_s3 = inlined_call_operand.vmem [shape: f32[1,256], index: 3, kind: input, shape index: {}]   ;;  %s5735_s4 = inlined_call_operand.vmem [shape: f32[1,256], index: 4, kind: input, shape index: {}]   ;;  %s5736_s5 = inlined_call_operand.vmem [shape: bf16[256,64], index: 5, kind: input, shape index: {}]   ;;  %s5737_s6 = inlined_call_operand.vmem [shape: f32[1,64], index: 6, kind: input, shape index: {}]   ;;  %s5738_s7 = inlined_call_operand.vmem [shape: f32[1,64], index: 7, kind: input, shape index: {}]   ;;  %s5739_s8 = inlined_call_operand.vmem [shape: bf16[9,64,64], index: 8, kind: input, shape index: {}]   ;;  %s5740_s9 = inlined_call_operand.vmem [shape: f32[1,64], index: 9, kind: input, shape index: {}]   ;;  %s5741_s10 = inlined_call_operand.vmem [shape: f32[1,64], index: 10, kind: input, shape index: {}]   ;;  %s5742_s11 = inlined_call_operand.vmem [shape: bf16[64,256], index: 11, kind: input, shape index: {}]   ;;  %s5743_s12 = inlined_call_operand.vmem [shape: f32[1,256], index: 12, kind: input, shape index: {}]   ;;  %s5744_s13 = inlined_call_operand.vmem [shape: f32[1,256], index: 13, kind: input, shape index: {}]   ;;  %s5745_s14 = inlined_call_operand.vmem [shape: bf16[256,256], index: 14, kind: input, shape index: {}]   ;;  %s5746_s15 = inlined_call_operand.vmem [shape: f32[1,256], index: 15, kind: input, shape index: {}]   ;;  %s5747_s16 = inlined_call_operand.vmem [shape: f32[1,256], index: 16, kind: input, shape index: {}]   ;;  %s5748_s17 = inlined_call_operand.vmem [shape: f32[2,1,256], index: 17, kind: output, shape index: {0}]   ;;  %s5749_s18 = inlined_call_operand.vmem [shape: f32[2,1,256], index: 18, kind: output, shape index: {1}]  }
   0x1   :  { %5792 = sst [smem:[#allocation64_spill]] %s5731_s0 }
   0x2   :  { %5793 = sst [smem:[#allocation65_spill]] %s5732_s1 }
   0x3   :  { %5794 = sst [smem:[#allocation66_spill]] %s5733_s2 }
   0x4 LB: > { %s3389_s28 = sadd.s32 4294967295, %s4171_s27   ;;  %p3393_p0 = scmp.ge.s32.totalorder %s4171_s27, 1  ;;  %s4171_s27 = sphi %s4278_s27, %s29_s27  }
   0x5   : > { %p515_p1 = scmp.lt.s32.totalorder %s4171_s27, 3 }
   0x7   : > { %p516_p2 = pnand %p3393_p0, %p515_p1 }
   0x9   : > { %519 = sbr.rel (%p516_p2) target bundleno = 1309 (0x51d), region = 88 }
  0x10   : > { %p572_p3 = scmp.lt.s32.totalorder %s3389_s28, 1  ;;  %s5795_s0 = sld [smem:[#allocation66_spill]]  ;;  %v4323_v14 = vld [vmem:[%s5736_s5 + $0x40] sm:$0xff]   ;;  %v4338_v19 = vld [vmem:[%s5736_s5 + $0x48] sm:$0xff]   ;;  %v4362_v26 = vld [vmem:[%s5736_s5 + $0x50] sm:$0xff]   ;;  %vm1402_vm3 = vcmask 523264  }
  0x11   : > { %s5796_s24 = sld [smem:[#allocation64_spill]]  ;;  %v4330_v17 = vld [vmem:[%s5736_s5] sm:$0xff]   ;;  %3889 = vmatprep.subr.bf16.mxu1 %v4323_v14  ;;  %v4348_v21 = vld [vmem:[%s5736_s5 + $0x8] sm:$0xff]   ;;  %v4368_v27 = vld [vmem:[%s5736_s5 + $0x10] sm:$0xff]   ;;  %s5797_s19 = sld [smem:[#allocation65_spill]] }
  0x12   : > { %s5955_s28 = smov (!%p572_p3, %s3389_s28), 1  ;;  %3897 = vmatpush3.bf16.msra.mxu1 %v4330_v17  ;;  %v4382_v32 = vld [vmem:[%s5736_s5 + $0x58] sm:$0xff]   ;;  %v4402_v38 = vld [vmem:[%s5736_s5 + $0x60] sm:$0xff]   ;;  %v4422_v44 = vld [vmem:[%s5736_s5 + $0x68] sm:$0xff]  }
  0x13   : > { %s3632_s20 = sshll.u32 %s5955_s28, 8  ;;  %3890 = vmatprep.subr.bf16.mxu1 %v4338_v19  ;;  %v4388_v33 = vld [vmem:[%s5736_s5 + $0x18] sm:$0xff]   ;;  %v4408_v39 = vld [vmem:[%s5736_s5 + $0x20] sm:$0xff]   ;;  %v4428_v45 = vld [vmem:[%s5736_s5 + $0x28] sm:$0xff]   ;;  %s3396_s30 = sshll.u32 %s5955_s28, 1 }
  0x14   : > { %v4442_v50 = vld [vmem:[%s5736_s5 + $0x70] sm:$0xff]   ;;  %v4461_v55 = vld [vmem:[%s5736_s5 + $0x78] sm:$0xff]   ;;  %s580_s21 = scalar_lea.vmem %s5748_s17, %s3396_s30 }
  0x15   : > { %v4447_v51 = vld [vmem:[%s5736_s5 + $0x30] sm:$0xff]   ;;  %v4468_v57 = vld [vmem:[%s5736_s5 + $0x38] sm:$0xff]  }
  0x16   : > { %v4005_v0 = vld [vmem:[%s5795_s0 + $0x4] ss:$8 sps:$4 sm:$0xff]   ;;  %v4007_v1 = vld [vmem:[%s5795_s0] ss:$8 sps:$4 sm:$0xff]   ;;  %v4008_v2 = vld [vmem:[%s5795_s0 + $0x14] ss:$8 sps:$4 sm:$0xff]   ;;  %3898 = vmatpush3.bf16.msra.mxu1 %v4348_v21 }
  0x17   : > { %913 = vmatprep.subr.bf16.mxu0 %v4005_v0  ;;  %s4301_s25 = scalar_lea.vmem %s5796_s24, %s3632_s20  ;;  %v4010_v3 = vld [vmem:[%s5795_s0 + $0x10] ss:$8 sps:$4 sm:$0xff]   ;;  %v4011_v6 = vld [vmem:[%s5795_s0 + $0x24] ss:$8 sps:$4 sm:$0xff]   ;;  %v4013_v9 = vld [vmem:[%s5795_s0 + $0x20] ss:$8 sps:$4 sm:$0xff]   ;;  %3891 = vmatprep.subr.bf16.mxu1 %v4362_v26 }
  0x18   : > { %914 = vmatpush1.bf16.msra.mxu0 %v4007_v1  ;;  %v602_v4 = vld [vmem:[%s4301_s25 + $0x80] sm:$0xff]  ;;  %v603_v7 = vld [vmem:[%s4301_s25 + $0x88] sm:$0xff]  ;;  %v604_v10 = vld [vmem:[%s4301_s25 + $0x90] sm:$0xff] }
  0x19   : > { %v586_v5 = vld [vmem:[%s4301_s25] sm:$0xff]  ;;  %915 = vmatprep.subr.bf16.mxu0 %v4008_v2  ;;  %650 = vxpose.xlu0.b32.start [1/16] (narrow) %v602_v4, 64  ;;  %v587_v8 = vld [vmem:[%s4301_s25 + $0x8] sm:$0xff]  ;;  %v588_v11 = vld [vmem:[%s4301_s25 + $0x10] sm:$0xff] }
  0x1a   : > { %618 = vxpose.xlu1.b32.start [1/16] (narrow) %v586_v5, 64  ;;  %v605_v12 = vld [vmem:[%s4301_s25 + $0x98] sm:$0xff]  ;;  %v606_v15 = vld [vmem:[%s4301_s25 + $0xa0] sm:$0xff]  ;;  %v607_v22 = vld [vmem:[%s4301_s25 + $0xa8] sm:$0xff]  ;;  %3899 = vmatpush3.bf16.msra.mxu1 %v4368_v27 }
  0x1b   : > { %v589_v13 = vld [vmem:[%s4301_s25 + $0x18] sm:$0xff]  ;;  %v590_v16 = vld [vmem:[%s4301_s25 + $0x20] sm:$0xff]  ;;  %v591_v23 = vld [vmem:[%s4301_s25 + $0x28] sm:$0xff]  ;;  %3892 = vmatprep.subr.bf16.mxu1 %v4382_v32 }
  0x1c   : > { %916 = vmatpush1.bf16.msra.mxu0 %v4010_v3  ;;  %v4016_v18 = vld [vmem:[%s5795_s0 + $0x34] ss:$8 sps:$4 sm:$0xff]   ;;  %v4018_v20 = vld [vmem:[%s5795_s0 + $0x30] ss:$8 sps:$4 sm:$0xff]   ;;  %v4021_v24 = vld [vmem:[%s5795_s0 + $0x44] ss:$8 sps:$4 sm:$0xff]  }
  0x1d   : > { %917 = vmatprep.subr.bf16.mxu0 %v4011_v6  ;;  %651 = vxpose.xlu0.b32.cont [2/16] (narrow) %v603_v7, 64  ;;  %v4023_v25 = vld [vmem:[%s5795_s0 + $0x40] ss:$8 sps:$4 sm:$0xff]   ;;  %v608_v28 = vld [vmem:[%s4301_s25 + $0xb0] sm:$0xff]  ;;  %v609_v34 = vld [vmem:[%s4301_s25 + $0xb8] sm:$0xff] }
  0x1e   : > { %619 = vxpose.xlu1.b32.cont [2/16] (narrow) %v587_v8, 64  ;;  %v592_v29 = vld [vmem:[%s4301_s25 + $0x30] sm:$0xff]  ;;  %v593_v35 = vld [vmem:[%s4301_s25 + $0x38] sm:$0xff]  ;;  %v4031_v36 = vld [vmem:[%s5795_s0 + $0x64] ss:$8 sps:$4 sm:$0xff]   ;;  %3900 = vmatpush3.bf16.msra.mxu1 %v4388_v33 }
  0x1f   : > { %v4026_v30 = vld [vmem:[%s5795_s0 + $0x54] ss:$8 sps:$4 sm:$0xff]   ;;  %v4028_v31 = vld [vmem:[%s5795_s0 + $0x50] ss:$8 sps:$4 sm:$0xff]   ;;  %v4033_v37 = vld [vmem:[%s5795_s0 + $0x60] ss:$8 sps:$4 sm:$0xff]   ;;  %3893 = vmatprep.subr.bf16.mxu1 %v4402_v38 }
  0x20   : > { %918 = vmatpush1.bf16.msra.mxu0 %v4013_v9  ;;  %v610_v40 = vld [vmem:[%s4301_s25 + $0xc0] sm:$0xff]  ;;  %v4036_v42 = vld [vmem:[%s5795_s0 + $0x74] ss:$8 sps:$4 sm:$0xff]   ;;  %v4038_v43 = vld [vmem:[%s5795_s0 + $0x70] ss:$8 sps:$4 sm:$0xff]  }
  0x21   : > { %652 = vxpose.xlu0.b32.cont [3/16] (narrow) %v604_v10, 64  ;;  %919 = vmatprep.subr.bf16.mxu0 %v4016_v18  ;;  %v594_v41 = vld [vmem:[%s4301_s25 + $0x40] sm:$0xff]  ;;  %v611_v46 = vld [vmem:[%s4301_s25 + $0xc8] sm:$0xff]  ;;  %v4046_v52 = vld [vmem:[%s5795_s0 + $0x94] ss:$8 sps:$4 sm:$0xff]  }
  0x22   : > { %620 = vxpose.xlu1.b32.cont [3/16] (narrow) %v588_v11, 64  ;;  %3901 = vmatpush3.bf16.msra.mxu1 %v4408_v39  ;;  %v595_v47 = vld [vmem:[%s4301_s25 + $0x48] sm:$0xff]  ;;  %v4048_v53 = vld [vmem:[%s5795_s0 + $0x90] ss:$8 sps:$4 sm:$0xff]   ;;  %v4054_v62 = vld [vmem:[%s5795_s0 + $0xb4] ss:$8 sps:$4 sm:$0xff]  }
  0x23   : > { %3894 = vmatprep.subr.bf16.mxu1 %v4422_v44  ;;  %v4041_v48 = vld [vmem:[%s5795_s0 + $0x84] ss:$8 sps:$4 sm:$0xff]   ;;  %v4043_v49 = vld [vmem:[%s5795_s0 + $0x80] ss:$8 sps:$4 sm:$0xff]   ;;  %v612_v54 = vld [vmem:[%s4301_s25 + $0xd0] sm:$0xff] }
  0x24   : > { %920 = vmatpush1.bf16.msra.mxu0 %v4018_v20  ;;  %v596_v56 = vld [vmem:[%s4301_s25 + $0x50] sm:$0xff]  ;;  %v4051_v58 = vld [vmem:[%s5795_s0 + $0xa4] ss:$8 sps:$4 sm:$0xff]   ;;  %v613_v59 = vld [vmem:[%s4301_s25 + $0xd8] sm:$0xff]  ;;  %v4173_v20 = vmov 1  }
  0x25   : > { %653 = vxpose.xlu0.b32.cont [4/16] (narrow) %v605_v12, 64  ;;  %921 = vmatprep.subr.bf16.mxu0 %v4021_v24  ;;  %v4053_v60 = vld [vmem:[%s5795_s0 + $0xa0] ss:$8 sps:$4 sm:$0xff]   ;;  %v597_v61 = vld [vmem:[%s4301_s25 + $0x58] sm:$0xff]  ;;  %v4057_v2 = vld [vmem:[%s5795_s0 + $0xc4] ss:$8 sps:$4 sm:$0xff]  }
  0x26   : > { %621 = vxpose.xlu1.b32.cont [4/16] (narrow) %v589_v13, 64  ;;  %3902 = vmatpush3.bf16.msra.mxu1 %v4428_v45  ;;  %v614_v63 = vld [vmem:[%s4301_s25 + $0xe0] sm:$0xff]  ;;  %v4056_v1 = vld [vmem:[%s5795_s0 + $0xb0] ss:$8 sps:$4 sm:$0xff]   ;;  %v615_v4 = vld [vmem:[%s4301_s25 + $0xe8] sm:$0xff] }
  0x27   : > { %3895 = vmatprep.subr.bf16.mxu1 %v4442_v50  ;;  %v598_v0 = vld [vmem:[%s4301_s25 + $0x60] sm:$0xff]  ;;  %v599_v5 = vld [vmem:[%s4301_s25 + $0x68] sm:$0xff]  ;;  %v4060_v6 = vld [vmem:[%s5795_s0 + $0xd4] ss:$8 sps:$4 sm:$0xff]  }
  0x28   : > { %922 = vmatpush1.bf16.msra.mxu0 %v4023_v25  ;;  %v4059_v3 = vld [vmem:[%s5795_s0 + $0xc0] ss:$8 sps:$4 sm:$0xff]   ;;  %v4062_v7 = vld [vmem:[%s5795_s0 + $0xd0] ss:$8 sps:$4 sm:$0xff]   ;;  %v4063_v10 = vld [vmem:[%s5795_s0 + $0xe4] ss:$8 sps:$4 sm:$0xff]  }
  0x29   : > { %654 = vxpose.xlu0.b32.cont [5/16] (narrow) %v606_v15, 64  ;;  %923 = vmatprep.subr.bf16.mxu0 %v4026_v30  ;;  %v616_v8 = vld [vmem:[%s4301_s25 + $0xf0] sm:$0xff]  ;;  %v4065_v11 = vld [vmem:[%s5795_s0 + $0xe0] ss:$8 sps:$4 sm:$0xff]   ;;  %v617_v12 = vld [vmem:[%s4301_s25 + $0xf8] sm:$0xff]  ;;  %v5752_v30 = vmov 0  }
  0x2a   : > { %622 = vxpose.xlu1.b32.cont [5/16] (narrow) %v590_v16, 64  ;;  %3903 = vmatpush3.bf16.msra.mxu1 %v4447_v51  ;;  %v600_v9 = vld [vmem:[%s4301_s25 + $0x70] sm:$0xff]  ;;  %v601_v13 = vld [vmem:[%s4301_s25 + $0x78] sm:$0xff]  ;;  %v4522_v18 = vld [vmem:[%s5797_s19 + $0x8] sm:$0xff]  ;;  %s584_s25 = scalar_lea.vmem %s5749_s18, %s3396_s30 }
  0x2b   : > { %3896 = vmatprep.subr.bf16.mxu1 %v4461_v55  ;;  %v4066_v15 = vld [vmem:[%s5795_s0 + $0xf4] ss:$8 sps:$4 sm:$0xff]   ;;  %v4068_v16 = vld [vmem:[%s5795_s0 + $0xf0] ss:$8 sps:$4 sm:$0xff]   ;;  %v4545_v24 = vld [vmem:[%s5797_s19] sm:$0xff] }
  0x2c   : > { %924 = vmatpush1.bf16.msra.mxu0 %v4028_v31  ;;  %v4552_v25 = vld [vmem:[%s5797_s19 + $0x30] sm:$0xff]  ;;  %v4175_v31 = vmov 2  }
  0x2d   : > { %655 = vxpose.xlu0.b32.cont [6/16] (narrow) %v607_v22, 64  ;;  %925 = vmatprep.subr.bf16.mxu0 %v4031_v36  ;;  %v4528_v22 = vld [vmem:[%s5797_s19 + $0x10] sm:$0xff] }
  0x2e   : > { %623 = vxpose.xlu1.b32.cont [6/16] (narrow) %v591_v23, 64  ;;  %3904 = vmatpush3.bf16.msra.mxu1 %v4468_v57  ;;  %v4540_v23 = vld [vmem:[%s5797_s19 + $0x20] sm:$0xff] }
  0x30   : > { %926 = vmatpush1.bf16.msra.mxu0 %v4033_v37 }
  0x31   : > { %656 = vxpose.xlu0.b32.cont [7/16] (narrow) %v608_v28, 64  ;;  %927 = vmatprep.subr.bf16.mxu0 %v4036_v42  ;;  %v4557_v28 = vld [vmem:[%s5797_s19 + $0x28] sm:$0xff] }
  0x32   : > { %624 = vxpose.xlu1.b32.cont [7/16] (narrow) %v592_v29, 64  ;;  %v4564_v29 = vld [vmem:[%s5797_s19 + $0x38] sm:$0xff] }
  0x34   : > { %928 = vmatpush1.bf16.msra.mxu0 %v4038_v43 }
  0x35   : > { %657 = vxpose.xlu0.b32.cont [8/16] (narrow) %v609_v34, 64  ;;  %929 = vmatprep.subr.bf16.mxu0 %v4041_v48  ;;  %v4176_v48 = vmov 3  }
  0x36   : > { %625 = vxpose.xlu1.b32.cont [8/16] (narrow) %v593_v35, 64 }
  0x38   : > { %930 = vmatpush1.bf16.msra.mxu0 %v4043_v49 }
  0x39   : > { %658 = vxpose.xlu0.b32.cont [9/16] (narrow) %v610_v40, 64  ;;  %931 = vmatprep.subr.bf16.mxu0 %v4046_v52 }
  0x3a   : > { %626 = vxpose.xlu1.b32.cont [9/16] (narrow) %v594_v41, 64 }
  0x3c   : > { %932 = vmatpush1.bf16.msra.mxu0 %v4048_v53 }
  0x3d   : > { %659 = vxpose.xlu0.b32.cont [10/16] (narrow) %v611_v46, 64  ;;  %933 = vmatprep.subr.bf16.mxu0 %v4051_v58 }
  0x3e   : > { %627 = vxpose.xlu1.b32.cont [10/16] (narrow) %v595_v47, 64 }
  0x40   : > { %934 = vmatpush1.bf16.msra.mxu0 %v4053_v60 }
  0x41   : > { %660 = vxpose.xlu0.b32.cont [11/16] (narrow) %v612_v54, 64  ;;  %935 = vmatprep.subr.bf16.mxu0 %v4054_v62 }
  0x42   : > { %628 = vxpose.xlu1.b32.cont [11/16] (narrow) %v596_v56, 64 }
  0x44   : > { %936 = vmatpush1.bf16.msra.mxu0 %v4056_v1 }
  0x45   : > { %661 = vxpose.xlu0.b32.cont [12/16] (narrow) %v613_v59, 64  ;;  %937 = vmatprep.subr.bf16.mxu0 %v4057_v2 }
  0x46   : > { %629 = vxpose.xlu1.b32.cont [12/16] (narrow) %v597_v61, 64 }
  0x48   : > { %938 = vmatpush1.bf16.msra.mxu0 %v4059_v3 }
  0x49   : > { %662 = vxpose.xlu0.b32.cont [13/16] (narrow) %v614_v63, 64  ;;  %939 = vmatprep.subr.bf16.mxu0 %v4060_v6 }
  0x4a   : > { %630 = vxpose.xlu1.b32.cont [13/16] (narrow) %v598_v0, 64 }
  0x4c   : > { %940 = vmatpush1.bf16.msra.mxu0 %v4062_v7 }
  0x4d   : > { %663 = vxpose.xlu0.b32.cont [14/16] (narrow) %v615_v4, 64  ;;  %941 = vmatprep.subr.bf16.mxu0 %v4063_v10 }
  0x4e   : > { %631 = vxpose.xlu1.b32.cont [14/16] (narrow) %v599_v5, 64 }
  0x50   : > { %942 = vmatpush1.bf16.msra.mxu0 %v4065_v11 }
  0x51   : > { %664 = vxpose.xlu0.b32.cont [15/16] (narrow) %v616_v8, 64  ;;  %943 = vmatprep.subr.bf16.mxu0 %v4066_v15 }
  0x52   : > { %632 = vxpose.xlu1.b32.cont [15/16] (narrow) %v600_v9, 64 }
  0x54   : > { %944 = vmatpush1.bf16.msra.mxu0 %v4068_v16 }
  0x55   : > { %665 = vxpose.xlu0.b32.end [16/16] (narrow) %v617_v12, 64  ;;  %3633 = vmatprep.subr.bf16.mxu0 %v4323_v14  ;;  %v4534_v14 = vld [vmem:[%s5797_s19 + $0x18] sm:$0xff] }
  0x56   : > { %633 = vxpose.xlu1.b32.end [16/16] (narrow) %v601_v13, 64  ;;  %v4177_v13 = vmov 4  }
  0x74   : > { %3988 = vset.pattern.permute.xlu1 %v4173_v20 }
  0x75   : > { %1330 = vperm.xlu1 %3988, %v4522_v18  }
  0x79   : > { %1334 = vperm.xlu1 %3988, %v4528_v22  }
  0x7d   : > { %1338 = vperm.xlu1 %3988, %v4534_v14  }
  0x7e   : > { %3987 = vset.pattern.permute.xlu0 %v4173_v20 }
  0x7f   : > { %1326 = vperm.xlu0 %3987, %v4545_v24  }
  0x81   : > { %1342 = vperm.xlu1 %3988, %v4540_v23  }
  0x83   : > { %1346 = vperm.xlu0 %3987, %v4557_v28  }
  0x85   : > { %1350 = vperm.xlu1 %3988, %v4552_v25  }
  0x87   : > { %1354 = vperm.xlu0 %3987, %v4564_v29  }
  0x89   : > { %3989 = vset.pattern.permute.xlu1 %v5752_v30 }
  0x8a   : > { %1267 = vperm.xlu1 %3989, %v4545_v24  }
  0x8b   : > { %3990 = vset.pattern.permute.xlu0 %v5752_v30 }
  0x8c   : > { %1272 = vperm.xlu0 %3990, %v4522_v18  }
  0x8e   : > { %1277 = vperm.xlu1 %3989, %v4528_v22  }
  0x90   : > { %1287 = vperm.xlu0 %3990, %v4540_v23  }
  0x92   : > { %1282 = vperm.xlu1 %3989, %v4534_v14  }
  0x94   : > { %1297 = vperm.xlu0 %3990, %v4552_v25  }
  0x96   : > { %1292 = vperm.xlu1 %3989, %v4557_v28  }
  0x98   : > { %3991 = vset.pattern.permute.xlu0 %v4175_v31 }
  0x99   : > { %v4576_v34 = vpop.trf.xlu0  ;;  %1599 = vperm.xlu0 %3991, %v4545_v24  }
  0x9a   : > { %5798 = vst [vmem:[#allocation2_spill] sm:$0xff] %v4576_v34  ;;  %v4578_v35 = vpop.trf.xlu1  ;;  %1302 = vperm.xlu1 %3989, %v4564_v29  }
  0x9b   : > { %5799 = vst [vmem:[#allocation3_spill] sm:$0xff] %v4578_v35 }
  0x9d   : > { %v4582_v36 = vpop.trf.xlu0  ;;  %1611 = vperm.xlu0 %3991, %v4534_v14  }
  0x9e   : > { %5800 = vst [vmem:[#allocation4_spill] sm:$0xff] %v4582_v36  ;;  %v4584_v37 = vpop.trf.xlu1  ;;  %3992 = vset.pattern.permute.xlu1 %v4175_v31  ;;  %v703_v49 = vadd.f32 %v4582_v36, %v4576_v34 }
  0x9f   : > { %5801 = vst [vmem:[#allocation5_spill] sm:$0xff] %v4584_v37  ;;  %1603 = vperm.xlu1 %3992, %v4522_v18   ;;  %v690_v52 = vadd.f32 %v4584_v37, %v4578_v35 }
  0xa1   : > { %v4588_v40 = vpop.trf.xlu0  ;;  %1619 = vperm.xlu0 %3991, %v4557_v28  }
  0xa2   : > { %5802 = vst [vmem:[#allocation6_spill] sm:$0xff] %v4588_v40  ;;  %v4590_v41 = vpop.trf.xlu1  ;;  %v704_v53 = vadd.f32 %v703_v49, %v4588_v40 }
  0xa3   : > { %5803 = vst [vmem:[#allocation7_spill] sm:$0xff] %v4590_v41  ;;  %1607 = vperm.xlu1 %3992, %v4528_v22   ;;  %v691_v54 = vadd.f32 %v690_v52, %v4590_v41 }
  0xa5   : > { %v4594_v42 = vpop.trf.xlu0  ;;  %1627 = vperm.xlu0 %3991, %v4564_v29  }
  0xa6   : > { %5804 = vst [vmem:[#allocation8_spill] sm:$0xff] %v4594_v42  ;;  %v4596_v43 = vpop.trf.xlu1  ;;  %v705_v59 = vadd.f32 %v704_v53, %v4594_v42 }
  0xa7   : > { %5805 = vst [vmem:[#allocation9_spill] sm:$0xff] %v4596_v43  ;;  %1615 = vperm.xlu1 %3992, %v4540_v23   ;;  %v692_v60 = vadd.f32 %v691_v54, %v4596_v43 }
  0xa9   : > { %v4600_v46 = vpop.trf.xlu0  ;;  %3994 = vset.pattern.permute.xlu0 %v4176_v48 }
  0xaa   : > { %5806 = vst [vmem:[#allocation10_spill] sm:$0xff] %v4600_v46  ;;  %v4602_v47 = vpop.trf.xlu1  ;;  %1765 = vperm.xlu0 %3994, %v4522_v18   ;;  %v706_v63 = vadd.f32 %v705_v59, %v4600_v46 }
  0xab   : > { %5807 = vst [vmem:[#allocation11_spill] sm:$0xff] %v4602_v47  ;;  %1623 = vperm.xlu1 %3992, %v4552_v25   ;;  %v693_v0 = vadd.f32 %v692_v60, %v4602_v47 }
  0xad   : > { %v4612_v56 = vpop.trf.xlu0 }
  0xae   : > { %5808 = vst [vmem:[#allocation12_spill] sm:$0xff] %v4612_v56  ;;  %v4614_v58 = vpop.trf.xlu1  ;;  %v687_v62 = vpack.c.bf16 %v4612_v56, %v4600_v46  ;;  %1777 = vperm.xlu0 %3994, %v4540_v23   ;;  %v707_v3 = vadd.f32 %v706_v63, %v4612_v56 }
  0xaf   : > { %5809 = vst [vmem:[#allocation13_spill] sm:$0xff] %v4614_v58  ;;  %v686_v61 = vpack.c.bf16 %v4614_v58, %v4602_v47  ;;  %3993 = vset.pattern.permute.xlu1 %v4176_v48  ;;  %v694_v4 = vadd.f32 %v693_v0, %v4614_v58 }
  0xb0   : > { %1761 = vperm.xlu1 %3993, %v4545_v24   ;;  %1183 = vmatprep.mubr.bf16.mxu1 %v687_v62 }
  0xb1   : > { %v4626_v1 = vpop.trf.xlu0  ;;  %1184 = vmatmul.mubr.bf16.vlgmr.msra.gmra.mrb[0].mxu1 %v686_v61 }
  0xb2   : > { %5810 = vst [vmem:[#allocation14_spill] sm:$0xff] %v4626_v1  ;;  %v4628_v2 = vpop.trf.xlu1  ;;  %1785 = vperm.xlu0 %3994, %v4552_v25   ;;  %v708_v5 = vadd.f32 %v707_v3, %v4626_v1 }
  0xb3   : > { %5811 = vst [vmem:[#allocation15_spill] sm:$0xff] %v4628_v2  ;;  %v695_v6 = vadd.f32 %v694_v4, %v4628_v2  ;;  %v683_v4 = vpack.c.bf16 %v4582_v36, %v4576_v34 }
  0xb4   : > { %1769 = vperm.xlu1 %3993, %v4528_v22  }
  0xb5   : > { %v4636_v7 = vpop.trf.xlu0 }
  0xb6   : > { %5812 = vst [vmem:[#allocation16_spill] sm:$0xff] %v4636_v7  ;;  %v4638_v8 = vpop.trf.xlu1  ;;  %v689_v9 = vpack.c.bf16 %v4636_v7, %v4626_v1  ;;  %v709_v10 = vadd.f32 %v708_v5, %v4636_v7  ;;  %3995 = vset.pattern.permute.xlu0 %v4177_v13  ;;  %v4178_v5 = vmov 5  }
  0xb7   : > { %5813 = vst [vmem:[#allocation17_spill] sm:$0xff] %v4638_v8  ;;  %v688_v11 = vpack.c.bf16 %v4638_v8, %v4628_v2  ;;  %v696_v12 = vadd.f32 %v695_v6, %v4638_v8  ;;  %1923 = vperm.xlu0 %3995, %v4545_v24  }
  0xb8   : > { %1773 = vperm.xlu1 %3993, %v4534_v14   ;;  %v710_v15 = vrot.slane %v709_v10, 4  ;;  %1191 = vmatprep.mubr.bf16.mxu1 %v689_v9 }
  0xb9   : > { %v697_v16 = vrot.slane %v696_v12, 4  ;;  %1192 = vmatmul.mubr.bf16.gmra.mrb[4].mxu1 %v688_v11 }
  0xba   : > { %v711_v31 = vadd.f32 %v710_v15, %v709_v10 }
  0xbb   : > { %v698_v20 = vadd.f32 %v697_v16, %v696_v12  ;;  %1935 = vperm.xlu0 %3995, %v4534_v14  }
  0xbc   : > { %1781 = vperm.xlu1 %3993, %v4557_v28   ;;  %v712_v49 = vrot.slane %v711_v31, 2 }
  0xbd   : > { %v699_v48 = vrot.slane %v698_v20, 2 }
  0xbe   : > { %v713_v52 = vadd.f32 %v712_v49, %v711_v31 }
  0xbf   : > { %v700_v53 = vadd.f32 %v699_v48, %v698_v20  ;;  %1943 = vperm.xlu0 %3995, %v4557_v28  }
  0xc0   : > { %1789 = vperm.xlu1 %3993, %v4564_v29   ;;  %v714_v54 = vrot.slane %v713_v52, 1 }
  0xc1   : > { %v701_v59 = vrot.slane %v700_v53, 1 }
  0xc2   : > { %v715_v60 = vadd.f32 %v714_v54, %v713_v52 }
  0xc3   : > { %v702_v61 = vadd.f32 %v701_v59, %v700_v53  ;;  %1951 = vperm.xlu0 %3995, %v4564_v29  }
  0xc4   : > { %3996 = vset.pattern.permute.xlu1 %v4177_v13  ;;  %v718_v62 = vmul.f32 0.015625, %v715_v60 }
  0xc5   : > { %1927 = vperm.xlu1 %3996, %v4522_v18   ;;  %v717_v63 = vmul.f32 0.015625, %v702_v61  ;;  %v4069_v61 = vld [vmem:[%s5739_s8 + $0x20] sm:$0xff]  }
  0xc6   : > { %v720_v0 = vpack.c.bf16 %v718_v62, %v718_v62  ;;  %3745 = vmatprep.subr.bf16.mxu1 %v4069_v61 }
  0xc7   : > { %v719_v3 = vpack.c.bf16 %v717_v63, %v717_v63  ;;  %3998 = vset.pattern.permute.xlu0 %v4178_v5  ;;  %3746 = vmatpush3.bf16.msra.mxu1 %v4069_v61  ;;  %v4070_v63 = vld [vmem:[%s5739_s8 + $0x28] sm:$0xff]  }
  0xc8   : > { %945 = vmatprep.mubr.bf16.mxu0 %v720_v0  ;;  %2089 = vperm.xlu0 %3998, %v4522_v18  }
  0xc9   : > { %1931 = vperm.xlu1 %3996, %v4528_v22   ;;  %946 = vmatmul.mubr.bf16.vlgmr.msra.gmra.mrb[0].mxu0 %v719_v3 }
  0xca   : > { %3634 = vmatpush3.bf16.msra.mxu0 %v4330_v17  ;;  %1167 = vmatprep.mubr.bf16.mxu0 %v683_v4  ;;  %v4179_v17 = vmov 6   ;;  %v4071_v4 = vld [vmem:[%s5739_s8 + $0x30] sm:$0xff]  }
  0xcb   : > { %3635 = vmatprep.subr.bf16.mxu0 %v4338_v19  ;;  %v682_v19 = vpack.c.bf16 %v4584_v37, %v4578_v35  ;;  %3747 = vmatprep.subr.bf16.mxu1 %v4070_v63 }
  0xcc   : > { %2101 = vperm.xlu0 %3998, %v4540_v23   ;;  %3748 = vmatpush3.bf16.msra.mxu1 %v4070_v63 }
  0xcd   : > { %1939 = vperm.xlu1 %3996, %v4540_v23   ;;  %3749 = vmatprep.subr.bf16.mxu1 %v4071_v4 }
  0xce   : > { %3636 = vmatpush3.bf16.msra.mxu0 %v4348_v21  ;;  %v685_v21 = vpack.c.bf16 %v4594_v42, %v4588_v40 }
  0xcf   : > { %3637 = vmatprep.subr.bf16.mxu0 %v4362_v26  ;;  %v4180_v26 = vmov 7  }
  0xd0   : > { %2109 = vperm.xlu0 %3998, %v4552_v25   ;;  %3750 = vmatpush3.bf16.msra.mxu1 %v4071_v4 }
  0xd1   : > { %1947 = vperm.xlu1 %3996, %v4552_v25  }
  0xd2   : > { %3638 = vmatpush3.bf16.msra.mxu0 %v4368_v27  ;;  %v684_v27 = vpack.c.bf16 %v4596_v43, %v4590_v41 }
  0xd3   : > { %3639 = vmatprep.subr.bf16.mxu0 %v4382_v32 }
  0xd4   : > { %3999 = vset.pattern.permute.xlu0 %v4179_v17 }
  0xd5   : > { %3997 = vset.pattern.permute.xlu1 %v4178_v5  ;;  %2247 = vperm.xlu0 %3999, %v4545_v24  }
  0xd6   : > { %2085 = vperm.xlu1 %3997, %v4545_v24   ;;  %3640 = vmatpush3.bf16.msra.mxu0 %v4388_v33 }
  0xd7   : > { %3641 = vmatprep.subr.bf16.mxu0 %v4402_v38  ;;  %v4181_v38 = vmov 8  }
  0xd9   : > { %2259 = vperm.xlu0 %3999, %v4534_v14  }
  0xda   : > { %2093 = vperm.xlu1 %3997, %v4528_v22   ;;  %3642 = vmatpush3.bf16.msra.mxu0 %v4408_v39 }
  0xdb   : > { %3643 = vmatprep.subr.bf16.mxu0 %v4422_v44 }
  0xdd   : > { %2267 = vperm.xlu0 %3999, %v4557_v28  }
  0xde   : > { %2097 = vperm.xlu1 %3997, %v4534_v14   ;;  %3644 = vmatpush3.bf16.msra.mxu0 %v4428_v45 }
  0xdf   : > { %3645 = vmatprep.subr.bf16.mxu0 %v4442_v50 }
  0xe1   : > { %2275 = vperm.xlu0 %3999, %v4564_v29  }
  0xe2   : > { %2105 = vperm.xlu1 %3997, %v4557_v28   ;;  %3646 = vmatpush3.bf16.msra.mxu0 %v4447_v51 }
  0xe3   : > { %3647 = vmatprep.subr.bf16.mxu0 %v4461_v55 }
  0xe5   : > { %4002 = vset.pattern.permute.xlu0 %v4180_v26 }
  0xe6   : > { %2113 = vperm.xlu1 %3997, %v4564_v29   ;;  %3648 = vmatpush3.bf16.msra.mxu0 %v4468_v57 }
  0xe7   : > { %2413 = vperm.xlu0 %4002, %v4522_v18  }
  0xe9   : > { %1168 = vmatmul.mubr.bf16.vlgmr.msra.gmra.mrb[4].mxu0 %v682_v19  ;;  %v4072_v19 = vld [vmem:[%s5739_s8 + $0x38] sm:$0xff]  }
  0xea   : > { %4000 = vset.pattern.permute.xlu1 %v4179_v17  ;;  %1175 = vmatprep.mubr.bf16.mxu0 %v685_v21 }
  0xeb   : > { %2251 = vperm.xlu1 %4000, %v4522_v18   ;;  %2425 = vperm.xlu0 %4002, %v4540_v23  }
  0xec   : > { %3751 = vmatprep.subr.bf16.mxu1 %v4072_v19 }
  0xed   : > { %3752 = vmatpush3.bf16.msra.mxu1 %v4072_v19 }
  0xef   : > { %2255 = vperm.xlu1 %4000, %v4528_v22   ;;  %2433 = vperm.xlu0 %4002, %v4552_v25  }
  0xf1   : > { %1176 = vmatmul.mubr.bf16.gmra.mrb[8].mxu0 %v684_v27  ;;  %v4810_v27 = vld [vmem:[%s5739_s8] sm:$0xff]  }
  0xf2   : > { %2866 = vmatprep.mubr.bf16.mxu0 %v5752_v30  ;;  %5830 = vst [vmem:[#allocation34_spill] sm:$0xff] %v4810_v27  ;;  %3761 = vmatprep.subr.bf16.mxu1 %v4810_v27 }
  0xf3   : > { %2263 = vperm.xlu1 %4000, %v4540_v23   ;;  %4003 = vset.pattern.permute.xlu0 %v4181_v38 }
  0xf4   : > { %v4698_v32 = vpop.permute.xlu1 %1330  ;;  %2571 = vperm.xlu0 %4003, %v4545_v24  }
  0xf7   : > { %2271 = vperm.xlu1 %4000, %v4552_v25  }
  0xf8   : > { %v4702_v33 = vpop.permute.xlu1 %1334  ;;  %2583 = vperm.xlu0 %4003, %v4534_v14  }
  0xfb   : > { %4001 = vset.pattern.permute.xlu1 %v4180_v26 }
  0xfc   : > { %2409 = vperm.xlu1 %4001, %v4545_v24   ;;  %v4706_v39 = vpop.permute.xlu1 %1338  ;;  %2591 = vperm.xlu0 %4003, %v4557_v28  }
  0xfe   : > { %v4709_v44 = vpop.permute.xlu0 %1326 }
 0x100   : > { %2417 = vperm.xlu1 %4001, %v4528_v22   ;;  %v4712_v45 = vpop.permute.xlu1 %1342  ;;  %2599 = vperm.xlu0 %4003, %v4564_v29  }
 0x101   : > { %5814 = vst [vmem:[#allocation18_spill] sm:$0xff] %v4712_v45 }
 0x102   : > { %v4715_v50 = vpop.permute.xlu0 %1346 }
 0x104   : > { %2421 = vperm.xlu1 %4001, %v4534_v14   ;;  %v4718_v51 = vpop.permute.xlu1 %1350 }
 0x106   : > { %v4721_v55 = vpop.permute.xlu0 %1354 }
 0x108   : > { %2429 = vperm.xlu1 %4001, %v4557_v28  }
 0x109   : > { %v4724_v57 = vpop.permute.xlu1 %1267 }
 0x10b   : > { %v4727_v24 = vpop.permute.xlu0 %1272 }
 0x10c   : > { %2437 = vperm.xlu1 %4001, %v4564_v29  }
 0x10d   : > { %v4729_v6 = vpop.permute.xlu1 %1277 }
 0x10f   : > { %v4731_v9 = vpop.permute.xlu0 %1287 }
 0x110   : > { %4004 = vset.pattern.permute.xlu1 %v4181_v38  ;;  %5815 = vst [vmem:[#allocation19_spill] sm:$0xff] %v4731_v9 }
 0x111   : > { %2575 = vperm.xlu1 %4004, %v4522_v18   ;;  %v4734_v14 = vpop.permute.xlu1 %1282 }
 0x112   : > { %5816 = vst [vmem:[#allocation20_spill] sm:$0xff] %v4734_v14 }
 0x113   : > { %v4736_v10 = vpop.permute.xlu0 %1297 }
 0x115   : > { %2579 = vperm.xlu1 %4004, %v4528_v22   ;;  %v4739_v28 = vpop.permute.xlu1 %1292 }
 0x116   : > { %5817 = vst [vmem:[#allocation21_spill] sm:$0xff] %v4739_v28 }
 0x118   : > { %v4744_v11 = vpop.permute.xlu0 %1599 }
 0x119   : > { %2587 = vperm.xlu1 %4004, %v4540_v23   ;;  %v4742_v29 = vpop.permute.xlu1 %1302 }
 0x11c   : > { %v4746_v12 = vpop.permute.xlu0 %1611 }
 0x11d   : > { %5818 = vst [vmem:[#allocation22_spill] sm:$0xff] %v4746_v12  ;;  %2595 = vperm.xlu1 %4004, %v4552_v25  }
 0x11e   : > { %v4749_v13 = vpop.permute.xlu1 %1603 }
 0x120   : > { %v4751_v18 = vpop.permute.xlu0 %1619 }
 0x122   : > { %v4753_v15 = vpop.permute.xlu1 %1607 }
 0x123   : > { %5819 = vst [vmem:[#allocation23_spill] sm:$0xff] %v4753_v15 }
 0x124   : > { %v4755_v16 = vpop.permute.xlu0 %1627 }
 0x126   : > { %v4757_v22 = vpop.permute.xlu1 %1615 }
 0x127   : > { %5820 = vst [vmem:[#allocation24_spill] sm:$0xff] %v4757_v22 }
 0x129   : > { %v4761_v23 = vpop.permute.xlu0 %1765 }
 0x12a   : > { %v4759_v20 = vpop.permute.xlu1 %1623  ;;  %5821 = vst [vmem:[#allocation25_spill] sm:$0xff] %v4761_v23 }
 0x12d   : > { %v4765_v48 = vpop.permute.xlu0 %1777 }
 0x12e   : > { %5823 = vst [vmem:[#allocation27_spill] sm:$0xff] %v4765_v48  ;;  %v5770_v48 = vlaneseq }
 0x12f   : > { %v4763_v31 = vpop.permute.xlu1 %1761 }
 0x130   : > { %5822 = vst [vmem:[#allocation26_spill] sm:$0xff] %v4763_v31 }
 0x131   : > { %v4769_v25 = vpop.permute.xlu0 %1785 }
 0x133   : > { %v4767_v49 = vpop.permute.xlu1 %1769 }
 0x134   : > { %5824 = vst [vmem:[#allocation28_spill] sm:$0xff] %v4767_v49 }
 0x136   : > { %v4775_v54 = vpop.permute.xlu0 %1923 }
 0x137   : > { %v4771_v52 = vpop.permute.xlu1 %1773 }
 0x138   : > { %5825 = vst [vmem:[#allocation29_spill] sm:$0xff] %v4771_v52 }
 0x13a   : > { %v4779_v60 = vpop.permute.xlu0 %1935 }
 0x13b   : > { %v4773_v53 = vpop.permute.xlu1 %1781  ;;  %5826 = vst [vmem:[#allocation30_spill] sm:$0xff] %v4779_v60 }
 0x13e   : > { %v4789_v0 = vpop.permute.xlu0 %1943 }
 0x13f   : > { %v4777_v59 = vpop.permute.xlu1 %1789 }
 0x142   : > { %v4798_v17 = vpop.permute.xlu0 %1951 }
 0x144   : > { %v4784_v62 = vpop.permute.xlu1 %1927 }
 0x145   : > { %5827 = vst [vmem:[#allocation31_spill] sm:$0xff] %v4784_v62 }
 0x147   : > { %v4805_v26 = vpop.permute.xlu0 %2089 }
 0x148   : > { %v4791_v3 = vpop.permute.xlu1 %1931  ;;  %5829 = vst [vmem:[#allocation33_spill] sm:$0xff] %v4805_v26 }
 0x149   : > { %5828 = vst [vmem:[#allocation32_spill] sm:$0xff] %v4791_v3 }
 0x14b   : > { %v4817_v63 = vpop.permute.xlu0 %2101 }
 0x14c   : > { %v4796_v5 = vpop.permute.xlu1 %1939 }
 0x14f   : > { %v4821_v30 = vpop.permute.xlu0 %2109 }
 0x150   : > { %v4803_v21 = vpop.permute.xlu1 %1947 }
 0x154   : > { %v4827_v8 = vpop.permute.xlu0 %2247 }
 0x155   : > { %v4812_v38 = vpop.permute.xlu1 %2085  ;;  %5833 = vst [vmem:[#allocation37_spill] sm:$0xff] %v4827_v8 }
 0x158   : > { %v4831_v2 = vpop.permute.xlu0 %2259 }
 0x159   : > { %v4815_v61 = vpop.permute.xlu1 %2093  ;;  %5835 = vst [vmem:[#allocation39_spill] sm:$0xff] %v4831_v2 }
 0x15a   : > { %5831 = vst [vmem:[#allocation35_spill] sm:$0xff] %v4815_v61 }
 0x15c   : > { %v4835_v58 = vpop.permute.xlu0 %2267 }
 0x15d   : > { %v4819_v4 = vpop.permute.xlu1 %2097 }
 0x15e   : > { %5832 = vst [vmem:[#allocation36_spill] sm:$0xff] %v4819_v4 }
 0x160   : > { %v4841_v42 = vpop.permute.xlu0 %2275 }
 0x161   : > { %v4823_v19 = vpop.permute.xlu1 %2105  ;;  %5837 = vst [vmem:[#allocation41_spill] sm:$0xff] %v4841_v42 }
 0x165   : > { %v4825_v7 = vpop.permute.xlu1 %2113 }
 0x166   : > { %v4845_v40 = vpop.permute.xlu0 %2413 }
 0x167   : > { %5839 = vst [vmem:[#allocation43_spill] sm:$0xff] %v4845_v40  ;;  %v4861_v40 = vld [vmem:[%s5738_s7] ss:$0 sm:$0xff] }
 0x16a   : > { %v4829_v1 = vpop.permute.xlu1 %2251  ;;  %v4851_v37 = vpop.permute.xlu0 %2425 }
 0x16b   : > { %5834 = vst [vmem:[#allocation38_spill] sm:$0xff] %v4829_v1  ;;  %v4856_v1 = vld [vmem:[%s5737_s6] ss:$0 sm:$0xff] }
 0x16e   : > { %v4833_v56 = vpop.permute.xlu1 %2255  ;;  %v4864_v22 = vpop.permute.xlu0 %2433 }
 0x16f   : > { %5836 = vst [vmem:[#allocation40_spill] sm:$0xff] %v4833_v56  ;;  %5841 = vst [vmem:[#allocation45_spill] sm:$0xff] %v4864_v22 }
 0x172   : > { %v4837_v46 = vpop.permute.xlu1 %2263 }
 0x176   : > { %v4839_v47 = vpop.permute.xlu1 %2271 }
 0x17b   : > { %v4843_v43 = vpop.permute.xlu1 %2409 }
 0x17c   : > { %5838 = vst [vmem:[#allocation42_spill] sm:$0xff] %v4843_v43 }
 0x17f   : > { %v4847_v36 = vpop.permute.xlu1 %2417 }
 0x180   : > { %5840 = vst [vmem:[#allocation44_spill] sm:$0xff] %v4847_v36 }
 0x183   : > { %v4849_v41 = vpop.permute.xlu1 %2421 }
 0x184   : > { %v3661_v34 = vpop.f32.mrb[0].mxu1 }
 0x185   : > { %v3662_v35 = vpop.f32.mrb[1].mxu1 }
 0x186   : > { %v3663_v8 = vadd.f32 %v3662_v35, %v3661_v34  ;;  %v3664_v62 = vpop.f32.mrb[2].mxu1  ;;  %v4871_v34 = vshrl.u32 %v5770_v48, 7  ;;  %v954_v48 = vld [vmem:[%s5734_s3] sm:$0x3] }
 0x187   : > { %v2430_v42 = vpop.permute.xlu1 %2429  ;;  %v3665_v43 = vpop.f32.mrb[3].mxu1 }
 0x188   : > { %v1211_v23 = vmul.f32 %v3663_v8, %v4856_v1  ;;  %v3666_v4 = vadd.f32 %v3665_v43, %v3664_v62  ;;  %v4876_v43 = vpop.permute.xlu0 %2571  ;;  %vm1589_vm0 = vcmp.lt.s32.totalorder %v4871_v34, 7  ;;  %v4882_v22 = vsub.s32 0, %v4871_v34 }
 0x189   : > { %5842 = vst [vmem:[#allocation46_spill] sm:$0xff] %v4876_v43  ;;  %vm1256_vm1 = vcmp.lt.s32.totalorder %v4871_v34, 1 }
 0x18a   : > { %v1226_v61 = vadd.f32 %v4861_v40, %v1211_v23  ;;  %v1212_v2 = vmul.f32 %v3666_v4, %v4856_v1  ;;  %5844 = vst [vmem:[#allocation48_spill] sm:$0xff] %v4882_v22  ;;  %v959_v36 = vrot.slane %v954_v48, %v4882_v22 }
 0x18b   : > { %v4868_v56 = vpop.permute.xlu1 %2437 }
 0x18c   : > { %v4873_v35 = vmax.f32 %v1226_v61, 0.0  ;;  %v1227_v52 = vadd.f32 %v4861_v40, %v1212_v2  ;;  %v3667_v49 = vpop.f32.mrb[4].mxu1  ;;  %v4885_v61 = vsub.s32 1, %v4871_v34  ;;  %v4921_v45 = vpop.permute.xlu0 %2583 }
 0x18d   : > { %v3668_v28 = vpop.f32.mrb[5].mxu1 }
 0x18e   : > { %v1235_v9 = vmax.f32 %v1227_v52, 0.0  ;;  %v3669_v8 = vadd.f32 %v3668_v28, %v3667_v49  ;;  %v3670_v62 = vpop.f32.mrb[6].mxu1  ;;  %5845 = vst [vmem:[#allocation49_spill] sm:$0xff] %v4885_v61  ;;  %v5772_v28 = vrot.slane %v4873_v35, 1 }
 0x18f   : > { %v3671_v23 = vpop.f32.mrb[7].mxu1 }
 0x190   : > { %v4879_v4 = vpop.permute.xlu1 %2575  ;;  %v1213_v2 = vmul.f32 %v3669_v8, %v4856_v1  ;;  %v3672_v52 = vadd.f32 %v3671_v23, %v3670_v62  ;;  %v1586_v49 = vrot.slane %v1235_v9, 1  ;;  %v1251_v43 = vrot.slane %v1235_v9, 7  ;;  %v968_v62 = vld [vmem:[%s5735_s4] sm:$0x3] }
 0x191   : > { %5843 = vst [vmem:[#allocation47_spill] sm:$0xff] %v4879_v4  ;;  %v4895_v27 = vmul.f32 %v4789_v0, %v1235_v9  ;;  %v4182_v4 = vmov 1966171168   ;;  %v5847_v0 = vrot.slane %v4873_v35, 7  ;;  %v977_v60 = vrot.slane %v968_v62, %v4885_v61 }
 0x192   : > { %v1228_v12 = vadd.f32 %v4861_v40, %v1213_v2  ;;  %v1214_v14 = vmul.f32 %v3672_v52, %v4856_v1  ;;  %v4903_v8 = vsel %vm1589_vm0, %v5772_v28, %v1586_v49  ;;  %v988_v26 = vunpack.c.l.s4 %v4182_v4 }
 0x193   : > { %v4914_v2 = vsel %vm1256_vm1, %v5847_v0, %v1251_v43  ;;  %v4918_v52 = vmul.f32 %v4796_v5, %v4873_v35  ;;  %v973_v4 = vrot.slane %v968_v62, %v4882_v22  ;;  %v4928_v0 = vmul.f32 %v4718_v51, %v1235_v9 }
 0x194   : > { %v4908_v23 = vpop.permute.xlu1 %2579  ;;  %v1236_v28 = vmax.f32 %v1228_v12, 0.0  ;;  %v1229_v15 = vadd.f32 %v4861_v40, %v1214_v14  ;;  %v989_v22 = vunpack.c.0.s8 %v988_v26  ;;  %v4942_v62 = vmul.f32 %v4851_v37, %v1235_v9 }
 0x195   : > { %5846 = vst [vmem:[#allocation50_spill] sm:$0xff] %v4908_v23  ;;  %5848 = vst [vmem:[#allocation51_spill] sm:$0xff] %v4918_v52  ;;  %v963_v23 = vrot.slane %v954_v48, %v4885_v61  ;;  %v4939_v48 = vmul.f32 %v4817_v63, %v4903_v8  ;;  %v2592_v61 = vpop.permute.xlu0 %2591  ;;  %v4953_v63 = vmul.f32 %v4736_v10, %v4914_v2 }
 0x196   : > { %v4932_v31 = vmax.f32 %v1229_v15, 0.0  ;;  %v1587_v12 = vrot.slane %v1236_v28, 1  ;;  %v4935_v14 = vmul.f32 %v4721_v55, %v1236_v28  ;;  %v1252_v3 = vrot.slane %v1236_v28, 7  ;;  %5849 = vst [vmem:[#allocation52_spill] sm:$0xff] %v4942_v62 }
 0x197   : > { %v4944_v51 = vmul.f32 %v2430_v42, %v1236_v28  ;;  %v4963_v9 = vmul.f32 %v4803_v21, %v1236_v28 }
 0x198   : > { %v1591_v5 = vsel %vm1589_vm0, %v1586_v49, %v1587_v12  ;;  %v2588_v15 = vpop.permute.xlu1 %2587  ;;  %v5778_v52 = vrot.slane %v4932_v31, 1  ;;  %v1258_v10 = vsel %vm1256_vm1, %v1251_v43, %v1252_v3  ;;  %v5853_v43 = vrot.slane %v4932_v31, 7 }
 0x199   : > { %5850 = vst [vmem:[#allocation53_spill] sm:$0xff] %v4944_v51  ;;  %v4956_v26 = vmul.f32 %v4759_v20, %v1591_v5  ;;  %v4959_v37 = vmul.f32 %v4823_v19, %v1591_v5  ;;  %v4973_v20 = vmul.f32 %v4798_v17, %v4932_v31  ;;  %v4979_v21 = vmul.f32 %v2588_v15, %v1591_v5 }
 0x19a   : > { %v1590_v49 = vsel %vm1589_vm0, %v1587_v12, %v5778_v52  ;;  %v1257_v17 = vsel %vm1256_vm1, %v1252_v3, %v5853_v43  ;;  %v4991_v52 = vmul.f32 %v4742_v29, %v1258_v10  ;;  %v4997_v5 = vmul.f32 %v4837_v46, %v4914_v2 }
 0x19b   : > { %5851 = vst [vmem:[#allocation54_spill] sm:$0xff] %v4979_v21  ;;  %v4982_v28 = vmul.f32 %v4755_v16, %v1590_v49  ;;  %v4984_v42 = vmul.f32 %v2592_v61, %v1590_v49  ;;  %v5004_v3 = vmul.f32 %v4769_v25, %v1258_v10  ;;  %v5009_v46 = vmul.f32 %v4777_v59, %v1257_v17 }
 0x19c   : > { %v947_v12 = vpop.f32.mrb[0].mxu0  ;;  %5854 = vst [vmem:[#allocation56_spill] sm:$0xff] %v4997_v5  ;;  %v5012_v16 = vmul.f32 %v4835_v58, %v1258_v10  ;;  %v5857_v58 = vlaneseq  ;;  %v5882_v5 = vld [vmem:[#allocation40_spill] sm:$0xff] }
 0x19d   : > { %5852 = vst [vmem:[#allocation55_spill] sm:$0xff] %v4984_v42  ;;  %v966_v15 = vmul.f32 %v959_v36, %v947_v12  ;;  %v949_v55 = vpop.f32.mrb[1].mxu0  ;;  %v5870_v12 = vld [vmem:[#allocation44_spill] sm:$0xff] }
 0x19e   : > { %v967_v29 = vmul.f32 %v963_v23, %v949_v55  ;;  %v951_v43 = vpop.f32.mrb[2].mxu0  ;;  %5855 = vst [vmem:[#allocation57_spill] sm:$0xff] %v5012_v16  ;;  %vm5029_vm2 = vcmp.lt.s32.totalorder %v5857_v58, 256  ;;  %v5049_v58 = vmul.f32 %v4751_v18, %v4903_v8  ;;  %v5066_v18 = vmul.f32 %v4773_v53, %v4914_v2 }
 0x19f   : > { %v980_v62 = vadd.f32 %v973_v4, %v966_v15  ;;  %v952_v61 = vpop.f32.mrb[3].mxu0  ;;  %v5019_v43 = vsub.s32 %v989_v22, %v4871_v34  ;;  %v4076_v34 = vld [vmem:[%s5739_s8 + $0x18] sm:$0xff]  }
 0x1a0   : > { %v981_v36 = vadd.f32 %v977_v60, %v967_v29  ;;  %v5858_v60 = vmov 0 }
 0x1a1   : > { %v982_v23 = vmax.f32 %v980_v62, 0.0  ;;  %5856 = vst [vmem:[#allocation58_spill] sm:$0xff] %v5019_v43  ;;  %v5859_v60 = vsel %vm5029_vm2, 4294967295, %v5858_v60 }
 0x1a2   : > { %v983_v55 = vmax.f32 %v981_v36, 0.0  ;;  %5860 = vst [vmem:[#allocation59_spill] sm:$0xff] %v5859_v60 }
 0x1a4   : > { %v986_v59 = vcombine.low %v982_v23, %v983_v55 }
 0x1a6   : > { %v993_v19 = vrot.slane %v986_v59, %v5019_v43  ;;  %v5041_v59 = vmul.f32 %v4849_v41, %v4873_v35  ;;  %v5057_v41 = vmul.f32 %v4821_v30, %v1590_v49 }
 0x1a8   : > { %v1000_v4 = vrot.slane %v993_v19, %v5019_v43  ;;  %v5045_v19 = vmul.f32 %v4715_v50, %v4873_v35  ;;  %5861 = vst [vmem:[#allocation60_spill] sm:$0xff] %v5057_v41  ;;  %v1357_v50 = vmul.f32 %v4709_v44, %v4932_v31  ;;  %v5075_v44 = vmul.f32 %v4839_v47, %v1257_v17 }
 0x1aa   : > { %1006 = vst.msk [vmem:[%s580_s21] sm:$0x3] %vm5029_vm2, %v1000_v4  ;;  %v5053_v4 = vmul.f32 %v4921_v45, %v4903_v8 }
 0x1bc   : > { %v3649_v22 = vpop.f32.mrb[4].mxu0 }
 0x1bd   : > { %v3650_v62 = vpop.f32.mrb[5].mxu0 }
 0x1be   : > { %v3651_v10 = vadd.f32 %v3650_v62, %v3649_v22  ;;  %v3652_v61 = vpop.f32.mrb[6].mxu0 }
 0x1bf   : > { %v3653_v15 = vpop.f32.mrb[7].mxu0 }
 0x1c0   : > { %v1207_v29 = vmul.f32 %v3651_v10, %v4856_v1  ;;  %v3654_v36 = vadd.f32 %v3653_v15, %v3652_v61  ;;  %v5062_v15 = vmul.f32 %v4724_v57, %v1257_v17 }
 0x1c2   : > { %v1222_v23 = vadd.f32 %v4861_v40, %v1207_v29  ;;  %v1208_v55 = vmul.f32 %v3654_v36, %v4856_v1 }
 0x1c4   : > { %v1230_v22 = vmax.f32 %v1222_v23, 0.0  ;;  %v1223_v62 = vadd.f32 %v4861_v40, %v1208_v55  ;;  %v3655_v10 = vpop.f32.mrb[8].mxu0 }
 0x1c5   : > { %v3656_v61 = vpop.f32.mrb[9].mxu0 }
 0x1c6   : > { %v5068_v45 = vmax.f32 %v1223_v62, 0.0  ;;  %v3657_v8 = vadd.f32 %v3656_v61, %v3655_v10  ;;  %v3658_v29 = vpop.f32.mrb[10].mxu0  ;;  %v1581_v36 = vrot.slane %v1230_v22, 1  ;;  %v1358_v23 = vmul.f32 %v4698_v32, %v1230_v22  ;;  %v2596_v32 = vpop.permute.xlu1 %2595 }
 0x1c7   : > { %v3659_v30 = vpop.f32.mrb[11].mxu0  ;;  %v1246_v49 = vrot.slane %v1230_v22, 7  ;;  %v5072_v55 = vmul.f32 %v4775_v54, %v1230_v22  ;;  %v5078_v57 = vmul.f32 %v4868_v56, %v1230_v22  ;;  %v5862_v61 = vrot.slane %v4932_v31, 1 }
 0x1c8   : > { %v1247_v53 = vrot.slane %v5068_v45, 7  ;;  %v1359_v2 = vmul.f32 %v4702_v33, %v5068_v45  ;;  %v1209_v62 = vmul.f32 %v3657_v8, %v4856_v1  ;;  %v3660_v10 = vadd.f32 %v3659_v30, %v3658_v29 }
 0x1c9   : > { %v1597_v54 = vsel %vm1589_vm0, %v5862_v61, %v1581_v36  ;;  %v1582_v47 = vrot.slane %v5068_v45, 1  ;;  %v1365_v17 = vpack.c.bf16 %v1358_v23, %v1357_v50  ;;  %v5863_v56 = vrot.slane %v4932_v31, 7  ;;  %v2600_v61 = vpop.permute.xlu0 %2599 }
 0x1ca   : > { %v1224_v33 = vadd.f32 %v4861_v40, %v1209_v62  ;;  %v1210_v8 = vmul.f32 %v3660_v10, %v4856_v1  ;;  %v5098_v29 = vmul.f32 %v4744_v11, %v1597_v54  ;;  %v5101_v30 = vmul.f32 %v4825_v7, %v1597_v54  ;;  %v5869_v62 = vld [vmem:[#allocation30_spill] sm:$0xff] }
 0x1cb   : > { %v5093_v22 = vsel %vm1256_vm1, %v5863_v56, %v1246_v49  ;;  %v5103_v25 = vmul.f32 %v2596_v32, %v1597_v54  ;;  %v1596_v50 = vsel %vm1589_vm0, %v1581_v36, %v1582_v47  ;;  %3753 = vmatprep.mubr.msk.bf16.mxu1 %vm1402_vm3, %v1365_v17  ;;  %v5110_v23 = vsel %vm1256_vm1, %v1246_v49, %v1247_v53  ;;  %v4074_v49 = vld [vmem:[%s5739_s8 + $0x8] sm:$0xff]  }
 0x1cc   : > { %5864 = vst [vmem:[#allocation61_spill] sm:$0xff] %v5101_v30  ;;  %v5114_v1 = vmul.f32 %v4727_v24, %v5093_v22  ;;  %v5116_v11 = vmax.f32 %v1224_v33, 0.0  ;;  %v1225_v7 = vadd.f32 %v4861_v40, %v1210_v8  ;;  %v5122_v10 = vmul.f32 %v4749_v13, %v1596_v50  ;;  %v5867_v13 = vld [vmem:[#allocation32_spill] sm:$0xff]  ;;  %v5871_v8 = vld [vmem:[#allocation18_spill] sm:$0xff] }
 0x1cd   : > { %5865 = vst [vmem:[#allocation62_spill] sm:$0xff] %v5103_v25  ;;  %v5125_v36 = vmul.f32 %v4812_v38, %v1596_v50  ;;  %v5127_v32 = vmul.f32 %v2600_v61, %v1596_v50  ;;  %v5133_v24 = vmul.f32 %v4729_v6, %v5110_v23  ;;  %v5868_v6 = vld [vmem:[#allocation26_spill] sm:$0xff] }
 0x1ce   : > { %v1248_v40 = vrot.slane %v5116_v11, 7  ;;  %v1360_v54 = vmul.f32 %v4706_v39, %v5116_v11  ;;  %v5140_v17 = vmul.f32 %v5867_v13, %v5116_v11  ;;  %v1233_v38 = vmax.f32 %v1225_v7, 0.0 }
 0x1cf   : > { %5866 = vst [vmem:[#allocation63_spill] sm:$0xff] %v5127_v32  ;;  %v1583_v56 = vrot.slane %v5116_v11, 1  ;;  %v5149_v61 = vmul.f32 %v5868_v6, %v5093_v22 }
 0x1d0   : > { %v1584_v50 = vrot.slane %v1233_v38, 1  ;;  %v5152_v39 = vmul.f32 %v5869_v62, %v1233_v38  ;;  %v5155_v13 = vmul.f32 %v5870_v12, %v1233_v38  ;;  %v1366_v7 = vpack.c.bf16 %v1360_v54, %v1359_v2  ;;  %v5872_v12 = vld [vmem:[#allocation23_spill] sm:$0xff]  ;;  %v5873_v54 = vld [vmem:[#allocation33_spill] sm:$0xff] }
 0x1d1   : > { %v5162_v33 = vsel %vm1589_vm0, %v1582_v47, %v1583_v56  ;;  %v1361_v60 = vmul.f32 %v5871_v8, %v1233_v38  ;;  %v1262_v6 = vsel %vm1256_vm1, %v1247_v53, %v1248_v40  ;;  %v1249_v43 = vrot.slane %v1233_v38, 7  ;;  %v5874_v47 = vld [vmem:[#allocation20_spill] sm:$0xff]  ;;  %v5875_v8 = vld [vmem:[#allocation22_spill] sm:$0xff] }
 0x1d2   : > { %v1594_v62 = vsel %vm1589_vm0, %v1583_v56, %v1584_v50  ;;  %v5171_v2 = vmul.f32 %v5872_v12, %v5162_v33  ;;  %v5175_v25 = vmul.f32 %v5873_v54, %v5162_v33  ;;  %3754 = vmatmul.mubr.msk.bf16.vlgmr.msra.gmra.mrb[8].mxu1 %vm1402_vm3, %v1366_v7  ;;  %v5179_v32 = vmul.f32 %v5874_v47, %v1262_v6  ;;  %v5876_v53 = vld [vmem:[#allocation34_spill] sm:$0xff]  ;;  %v4075_v47 = vld [vmem:[%s5739_s8 + $0x10] sm:$0xff]   ;;  %v5881_v7 = vld [vmem:[#allocation29_spill] sm:$0xff] }
 0x1d3   : > { %v5182_v21 = vmul.f32 %v5875_v8, %v1594_v62  ;;  %3762 = vmatpush3.bf16.msra.mxu1 %v5876_v53  ;;  %v1367_v38 = vpack.c.bf16 %v5045_v19, %v1361_v60  ;;  %v5877_v56 = vrot.slane %v4873_v35, 7  ;;  %v1261_v54 = vsel %vm1256_vm1, %v1248_v40, %v1249_v43  ;;  %v5878_v60 = vld [vmem:[#allocation19_spill] sm:$0xff]  ;;  %v5879_v53 = vld [vmem:[#allocation21_spill] sm:$0xff] }
 0x1d4   : > { %3763 = vmatprep.subr.bf16.mxu1 %v4074_v49  ;;  %v1314_v8 = vpack.c.bf16 %v5179_v32, %v5133_v24  ;;  %v1309_v19 = vmul.f32 %v5878_v60, %v1261_v54  ;;  %v5208_v51 = vmul.f32 %v5881_v7, %v1261_v54  ;;  %v5211_v16 = vmul.f32 %v5882_v5, %v1261_v54  ;;  %v5883_v32 = vld [vmem:[#allocation39_spill] sm:$0xff]  ;;  %v5887_v5 = vld [vmem:[#allocation36_spill] sm:$0xff]  ;;  %v5888_v54 = vld [vmem:[#allocation50_spill] sm:$0xff] }
 0x1d5   : > { %v1260_v12 = vsel %vm1256_vm1, %v1249_v43, %v5877_v56  ;;  %3757 = vmatprep.mubr.msk.bf16.mxu1 %vm1402_vm3, %v1367_v38  ;;  %v5880_v43 = vld [vmem:[#allocation28_spill] sm:$0xff]  ;;  %v5884_v60 = vrot.slane %v4873_v35, 1  ;;  %v5885_v56 = vld [vmem:[#allocation35_spill] sm:$0xff] }
 0x1d6   : > { %v1310_v42 = vmul.f32 %v5879_v53, %v1260_v12  ;;  %v5205_v40 = vmul.f32 %v5880_v43, %v1262_v6  ;;  %v5214_v24 = vmul.f32 %v5883_v32, %v1260_v12  ;;  %v5221_v38 = vmul.f32 %v5885_v56, %v1594_v62  ;;  %v5886_v43 = vld [vmem:[#allocation24_spill] sm:$0xff]  ;;  %v5890_v56 = vld [vmem:[#allocation27_spill] sm:$0xff] }
 0x1d7   : > { %v1593_v53 = vsel %vm1589_vm0, %v1584_v50, %v5884_v60  ;;  %3764 = vmatpush3.bf16.msra.mxu1 %v4074_v49  ;;  %v5889_v49 = vld [vmem:[#allocation25_spill] sm:$0xff]  ;;  %v5244_v32 = vmul.f32 %v5890_v56, %v1260_v12  ;;  %v5891_v60 = vld [vmem:[#allocation31_spill] sm:$0xff]  ;;  %v5892_v12 = vpack.c.bf16 %v4935_v14, %v4928_v0  ;;  %v5894_v14 = vpack.c.bf16 %v5114_v1, %v5062_v15  ;;  %v4077_v15 = vld [vmem:[%s5739_s8 + $0x40] sm:$0xff]  }
 0x1d8   : > { %v1315_v41 = vpack.c.bf16 %v1310_v42, %v1309_v19  ;;  %v1801_v7 = vpack.c.bf16 %v5208_v51, %v5205_v40  ;;  %v5226_v30 = vmul.f32 %v5886_v43, %v1593_v53  ;;  %v5229_v42 = vmul.f32 %v5887_v5, %v1593_v53  ;;  %3765 = vmatprep.subr.bf16.mxu1 %v4075_v47  ;;  %v4105_v35 = vld [vmem:[%s5742_s11] ss:$8 sps:$4 sm:$0xff]   ;;  %v4107_v0 = vld [vmem:[%s5742_s11 + $0x4] ss:$8 sps:$4 sm:$0xff]  }
 0x1d9   : > { %v5232_v19 = vmul.f32 %v5888_v54, %v1593_v53  ;;  %v5241_v50 = vmul.f32 %v5889_v49, %v5110_v23  ;;  %v5248_v43 = vmul.f32 %v5891_v60, %v5068_v45  ;;  %v5893_v60 = vld [vmem:[#allocation45_spill] sm:$0xff]  ;;  %v5898_v1 = vld [vmem:[#allocation42_spill] sm:$0xff]  ;;  %2834 = vmatprep.subr.bf16.mxu0 %v4107_v0  ;;  %v5906_v51 = vpack.c.bf16 %v5009_v46, %v5004_v3  ;;  %v5909_v46 = vld [vmem:[#allocation51_spill] sm:$0xff] }
 0x1da   : > { %v1640_v53 = vpack.c.bf16 %v5049_v58, %v5226_v30  ;;  %3758 = vmatmul.mubr.msk.bf16.gmra.mrb[12].mxu1 %vm1402_vm3, %v5892_v12  ;;  %v1802_v58 = vpack.c.bf16 %v5066_v18, %v5244_v32  ;;  %v5270_v54 = vmul.f32 %v5893_v60, %v4932_v31  ;;  %v5896_v31 = vld [vmem:[#allocation38_spill] sm:$0xff]  ;;  %v5897_v60 = vld [vmem:[#allocation41_spill] sm:$0xff]  ;;  %2835 = vmatpush1.bf16.msra.mxu0 %v4105_v35  ;;  %v4091_v32 = vld [vmem:[%s5739_s8 + $0xb0] sm:$0xff]  }
 0x1db   : > { %v1800_v56 = vpack.c.bf16 %v5241_v50, %v5149_v61  ;;  %3766 = vmatpush3.bf16.msra.mxu1 %v4075_v47  ;;  %3769 = vmatprep.mubr.msk.bf16.mxu1 %vm1402_vm3, %v5894_v14  ;;  %v5895_v61 = vld [vmem:[#allocation37_spill] sm:$0xff]  ;;  %v5287_v12 = vmul.f32 %v5896_v31, %v1262_v6  ;;  %v5291_v5 = vmul.f32 %v5897_v60, %v5093_v22  ;;  %v5899_v6 = vld [vmem:[#allocation43_spill] sm:$0xff]  ;;  %v5900_v49 = vld [vmem:[#allocation46_spill] sm:$0xff] }
 0x1dc   : > { %v5284_v50 = vmul.f32 %v5895_v61, %v5110_v23  ;;  %v4110_v47 = vld [vmem:[%s5742_s11 + $0x14] ss:$8 sps:$4 sm:$0xff]   ;;  %3767 = vmatprep.subr.bf16.mxu1 %v4076_v34  ;;  %v5301_v23 = vmul.f32 %v5898_v1, %v5068_v45  ;;  %v5305_v14 = vmul.f32 %v5899_v6, %v5116_v11  ;;  %v2449_v22 = vpack.c.bf16 %v5041_v59, %v5155_v13  ;;  %v5901_v1 = vld [vmem:[#allocation47_spill] sm:$0xff]  ;;  %v4108_v6 = vld [vmem:[%s5742_s11 + $0x10] ss:$8 sps:$4 sm:$0xff]  }
 0x1dd   : > { %v2289_v60 = vpack.c.bf16 %v5291_v5, %v5075_v44  ;;  %v5317_v45 = vmul.f32 %v5900_v49, %v5162_v33  ;;  %v5320_v30 = vmul.f32 %v5901_v1, %v1594_v62  ;;  %2836 = vmatprep.subr.bf16.mxu0 %v4110_v47  ;;  %v4078_v33 = vld [vmem:[%s5739_s8 + $0x48] sm:$0xff]   ;;  %v4079_v62 = vld [vmem:[%s5739_s8 + $0x50] sm:$0xff]   ;;  %v5902_v35 = vpack.c.bf16 %v4991_v52, %v4953_v63  ;;  %v4089_v40 = vld [vmem:[%s5739_s8 + $0xa0] sm:$0xff]  }
 0x1de   : > { %v2286_v31 = vpack.c.bf16 %v5287_v12, %v5284_v50  ;;  %v2448_v11 = vpack.c.bf16 %v5305_v14, %v5301_v23  ;;  %2837 = vmatpush1.bf16.msra.mxu0 %v4108_v6  ;;  %v4082_v49 = vld [vmem:[%s5739_s8 + $0x68] sm:$0xff]   ;;  %v5904_v52 = vpack.c.bf16 %v5182_v21, %v5171_v2  ;;  %v4083_v63 = vld [vmem:[%s5739_s8 + $0x70] sm:$0xff]   ;;  %v4085_v21 = vld [vmem:[%s5739_s8 + $0x80] sm:$0xff]   ;;  %v5907_v18 = vpack.c.bf16 %v5248_v43, %v5072_v55 }
 0x1df   : > { %3768 = vmatpush3.bf16.msra.mxu1 %v4076_v34  ;;  %v2610_v61 = vpack.c.bf16 %v5320_v30, %v5317_v45  ;;  %v4080_v34 = vld [vmem:[%s5739_s8 + $0x58] sm:$0xff]   ;;  %v4086_v2 = vld [vmem:[%s5739_s8 + $0x88] sm:$0xff]   ;;  %v5908_v3 = vpack.c.bf16 %v5152_v39, %v5140_v17  ;;  %v5910_v55 = vpack.c.bf16 %v4895_v27, %v5909_v46  ;;  %v5911_v17 = vpack.c.bf16 %v4973_v20, %v4963_v9  ;;  %v4093_v39 = vld [vmem:[%s5739_s8 + $0xc0] sm:$0xff]  }
 0x1e0   : > { %3777 = vmatprep.subr.bf16.mxu1 %v4077_v15  ;;  %v4092_v43 = vld [vmem:[%s5739_s8 + $0xb8] sm:$0xff]   ;;  %v5912_v27 = vpack.c.bf16 %v5175_v25, %v5125_v36  ;;  %v5913_v9 = vpack.c.bf16 %v5229_v42, %v5221_v38  ;;  %v5914_v20 = vpack.c.bf16 %v4959_v37, %v4939_v48  ;;  %v4095_v25 = vld [vmem:[%s5739_s8 + $0xd0] sm:$0xff]   ;;  %v4097_v48 = vld [vmem:[%s5739_s8 + $0xe0] sm:$0xff]   ;;  %v5925_v59 = vpack.c.bf16 %v5078_v57, %v5270_v54 }
 0x1e1   : > { %v4096_v36 = vld [vmem:[%s5739_s8 + $0xd8] sm:$0xff]   ;;  %v5916_v42 = vld [vmem:[#allocation60_spill] sm:$0xff]  ;;  %v4098_v37 = vld [vmem:[%s5739_s8 + $0xe8] sm:$0xff]   ;;  %v5926_v13 = vpack.c.bf16 %v5053_v4, %v5232_v19 }
 0x1e2   : > { %3770 = vmatmul.mubr.msk.bf16.vlgmr.msra.gmra.mrb[8].mxu1 %vm1402_vm3, %v1314_v8  ;;  %v4081_v8 = vld [vmem:[%s5739_s8 + $0x60] sm:$0xff]   ;;  %v5915_v38 = vld [vmem:[#allocation61_spill] sm:$0xff]  ;;  %v5920_v50 = vld [vmem:[#allocation56_spill] sm:$0xff] }
 0x1e3   : > { %3778 = vmatpush3.bf16.msra.mxu1 %v4077_v15  ;;  %3773 = vmatprep.mubr.msk.bf16.mxu1 %vm1402_vm3, %v1315_v41  ;;  %v5903_v41 = vpack.c.bf16 %v5122_v10, %v5098_v29  ;;  %v4084_v29 = vld [vmem:[%s5739_s8 + $0x78] sm:$0xff]   ;;  %v5905_v10 = vpack.c.bf16 %v4982_v28, %v4956_v26  ;;  %v4087_v26 = vld [vmem:[%s5739_s8 + $0x90] sm:$0xff]   ;;  %v5930_v57 = vld [vmem:[#allocation63_spill] sm:$0xff] }
 0x1e4   : > { %3779 = vmatprep.subr.bf16.mxu1 %v4078_v33  ;;  %v4088_v28 = vld [vmem:[%s5739_s8 + $0x98] sm:$0xff]   ;;  %v4099_v47 = vld [vmem:[%s5739_s8 + $0xf0] sm:$0xff]   ;;  %v5931_v54 = vld [vmem:[#allocation62_spill] sm:$0xff] }
 0x1e5   : > { %v5919_v0 = vld [vmem:[#allocation57_spill] sm:$0xff]  ;;  %v5923_v5 = vld [vmem:[#allocation52_spill] sm:$0xff]  ;;  %v4111_v30 = vld [vmem:[%s5742_s11 + $0x20] ss:$8 sps:$4 sm:$0xff]  }
 0x1e6   : > { %v5921_v12 = vpack.c.bf16 %v5919_v0, %v5920_v50  ;;  %v4100_v15 = vld [vmem:[%s5739_s8 + $0xf8] sm:$0xff]   ;;  %v4103_v14 = vld [vmem:[%s5739_s8 + $0x110] sm:$0xff]   ;;  %v4113_v4 = vld [vmem:[%s5742_s11 + $0x24] ss:$8 sps:$4 sm:$0xff]  }
 0x1e7   : > { %3780 = vmatpush3.bf16.msra.mxu1 %v4078_v33  ;;  %v5922_v44 = vld [vmem:[#allocation53_spill] sm:$0xff]  ;;  %2838 = vmatprep.subr.bf16.mxu0 %v4113_v4  ;;  %v4119_v45 = vld [vmem:[%s5745_s14 + $0x4] ss:$8 sps:$4 sm:$0xff]   ;;  %v3584_v6 = vld [vmem:[%s5740_s9] ss:$0 sm:$0xff] }
 0x1e8   : > { %3781 = vmatprep.subr.bf16.mxu1 %v4079_v62  ;;  %v5924_v23 = vpack.c.bf16 %v5922_v44, %v5923_v5  ;;  %v4116_v19 = vld [vmem:[%s5742_s11 + $0x34] ss:$8 sps:$4 sm:$0xff]   ;;  %2839 = vmatpush1.bf16.msra.mxu0 %v4111_v30  ;;  %v4131_v44 = vld [vmem:[%s5745_s14 + $0x44] ss:$8 sps:$4 sm:$0xff]   ;;  %v4129_v5 = vld [vmem:[%s5745_s14 + $0x40] ss:$8 sps:$4 sm:$0xff]  }
 0x1e9   : > { %2840 = vmatprep.subr.bf16.mxu0 %v4116_v19  ;;  %v4147_v30 = vld [vmem:[%s5745_s14 + $0xa0] ss:$8 sps:$4 sm:$0xff]   ;;  %v4152_v4 = vld [vmem:[%s5745_s14 + $0xb4] ss:$8 sps:$4 sm:$0xff]   ;;  %v4150_v19 = vld [vmem:[%s5745_s14 + $0xb0] ss:$8 sps:$4 sm:$0xff]  }
 0x1ea   : > { %3774 = vmatmul.mubr.msk.bf16.gmra.mrb[12].mxu1 %vm1402_vm3, %v5902_v35 }
 0x1eb   : > { %3782 = vmatpush3.bf16.msra.mxu1 %v4079_v62  ;;  %3785 = vmatprep.mubr.msk.bf16.mxu1 %vm1402_vm3, %v5903_v41  ;;  %v3585_v62 = vld [vmem:[%s5741_s10] ss:$0 sm:$0xff] }
 0x1ec   : > { %3783 = vmatprep.subr.bf16.mxu1 %v4080_v34 }
 0x1ef   : > { %3784 = vmatpush3.bf16.msra.mxu1 %v4080_v34 }
 0x1f0   : > { %3793 = vmatprep.subr.bf16.mxu1 %v4081_v8 }
 0x1f2   : > { %3786 = vmatmul.mubr.msk.bf16.vlgmr.msra.gmra.mrb[8].mxu1 %vm1402_vm3, %v5904_v52 }
 0x1f3   : > { %3794 = vmatpush3.bf16.msra.mxu1 %v4081_v8  ;;  %3789 = vmatprep.mubr.msk.bf16.mxu1 %vm1402_vm3, %v1640_v53  ;;  %v4094_v53 = vld [vmem:[%s5739_s8 + $0xc8] sm:$0xff]  }
 0x1f4   : > { %3795 = vmatprep.subr.bf16.mxu1 %v4082_v49 }
 0x1f7   : > { %3796 = vmatpush3.bf16.msra.mxu1 %v4082_v49 }
 0x1f8   : > { %3797 = vmatprep.subr.bf16.mxu1 %v4083_v63 }
 0x1fa   : > { %3790 = vmatmul.mubr.msk.bf16.gmra.mrb[12].mxu1 %vm1402_vm3, %v5905_v10 }
 0x1fb   : > { %3798 = vmatpush3.bf16.msra.mxu1 %v4083_v63  ;;  %3801 = vmatprep.mubr.msk.bf16.mxu1 %vm1402_vm3, %v1800_v56  ;;  %v5917_v56 = vpack.c.bf16 %v5915_v38, %v5916_v42  ;;  %v5933_v38 = vmov 0   ;;  %v4120_v42 = vld [vmem:[%s5745_s14 + $0x10] ss:$8 sps:$4 sm:$0xff]  }
 0x1fc   : > { %3799 = vmatprep.subr.bf16.mxu1 %v4084_v29 }
 0x1ff   : > { %3800 = vmatpush3.bf16.msra.mxu1 %v4084_v29 }
 0x200   : > { %3809 = vmatprep.subr.bf16.mxu1 %v4085_v21 }
 0x202   : > { %3802 = vmatmul.mubr.msk.bf16.vlgmr.msra.gmra.mrb[8].mxu1 %vm1402_vm3, %v1801_v7  ;;  %v4090_v7 = vld [vmem:[%s5739_s8 + $0xa8] sm:$0xff]  }
 0x203   : > { %3810 = vmatpush3.bf16.msra.mxu1 %v4085_v21  ;;  %3805 = vmatprep.mubr.msk.bf16.mxu1 %vm1402_vm3, %v1802_v58  ;;  %v5918_v58 = vpack.c.bf16 %v5214_v24, %v5211_v16  ;;  %v4101_v16 = vld [vmem:[%s5739_s8 + $0x100] sm:$0xff]   ;;  %v4102_v24 = vld [vmem:[%s5739_s8 + $0x108] sm:$0xff]  }
 0x204   : > { %3811 = vmatprep.subr.bf16.mxu1 %v4086_v2 }
 0x207   : > { %3812 = vmatpush3.bf16.msra.mxu1 %v4086_v2 }
 0x208   : > { %3813 = vmatprep.subr.bf16.mxu1 %v4087_v26 }
 0x20a   : > { %3806 = vmatmul.mubr.msk.bf16.gmra.mrb[12].mxu1 %vm1402_vm3, %v5906_v51 }
 0x20b   : > { %3814 = vmatpush3.bf16.msra.mxu1 %v4087_v26  ;;  %3817 = vmatprep.mubr.msk.bf16.mxu1 %vm1402_vm3, %v5907_v18 }
 0x20c   : > { %3815 = vmatprep.subr.bf16.mxu1 %v4088_v28 }
 0x20f   : > { %3816 = vmatpush3.bf16.msra.mxu1 %v4088_v28 }
 0x210   : > { %3825 = vmatprep.subr.bf16.mxu1 %v4089_v40 }
 0x212   : > { %3818 = vmatmul.mubr.msk.bf16.vlgmr.msra.gmra.mrb[8].mxu1 %vm1402_vm3, %v5908_v3 }
 0x213   : > { %3826 = vmatpush3.bf16.msra.mxu1 %v4089_v40  ;;  %3821 = vmatprep.mubr.msk.bf16.mxu1 %vm1402_vm3, %v5910_v55  ;;  %v4117_v55 = vld [vmem:[%s5745_s14] ss:$8 sps:$4 sm:$0xff]  }
 0x214   : > { %3827 = vmatprep.subr.bf16.mxu1 %v4090_v7 }
 0x217   : > { %3828 = vmatpush3.bf16.msra.mxu1 %v4090_v7 }
 0x218   : > { %3829 = vmatprep.subr.bf16.mxu1 %v4091_v32 }
 0x21a   : > { %3822 = vmatmul.mubr.msk.bf16.gmra.mrb[12].mxu1 %vm1402_vm3, %v5911_v17 }
 0x21b   : > { %3830 = vmatpush3.bf16.msra.mxu1 %v4091_v32  ;;  %3833 = vmatprep.mubr.msk.bf16.mxu1 %vm1402_vm3, %v5912_v27  ;;  %v4122_v27 = vld [vmem:[%s5745_s14 + $0x14] ss:$8 sps:$4 sm:$0xff]  }
 0x21c   : > { %3831 = vmatprep.subr.bf16.mxu1 %v4092_v43 }
 0x21f   : > { %3832 = vmatpush3.bf16.msra.mxu1 %v4092_v43 }
 0x220   : > { %3841 = vmatprep.subr.bf16.mxu1 %v4093_v39 }
 0x222   : > { %3834 = vmatmul.mubr.msk.bf16.vlgmr.msra.gmra.mrb[8].mxu1 %vm1402_vm3, %v5913_v9 }
 0x223   : > { %3842 = vmatpush3.bf16.msra.mxu1 %v4093_v39  ;;  %3837 = vmatprep.mubr.msk.bf16.mxu1 %vm1402_vm3, %v5914_v20 }
 0x224   : > { %3843 = vmatprep.subr.bf16.mxu1 %v4094_v53 }
 0x227   : > { %3844 = vmatpush3.bf16.msra.mxu1 %v4094_v53 }
 0x228   : > { %3845 = vmatprep.subr.bf16.mxu1 %v4095_v25 }
 0x22a   : > { %3838 = vmatmul.mubr.msk.bf16.gmra.mrb[12].mxu1 %vm1402_vm3, %v5917_v56 }
 0x22b   : > { %3846 = vmatpush3.bf16.msra.mxu1 %v4095_v25  ;;  %3849 = vmatprep.mubr.msk.bf16.mxu1 %vm1402_vm3, %v2286_v31  ;;  %v4104_v31 = vld [vmem:[%s5739_s8 + $0x118] sm:$0xff]  }
 0x22c   : > { %3847 = vmatprep.subr.bf16.mxu1 %v4096_v36 }
 0x22f   : > { %3848 = vmatpush3.bf16.msra.mxu1 %v4096_v36 }
 0x230   : > { %3857 = vmatprep.subr.bf16.mxu1 %v4097_v48 }
 0x232   : > { %3850 = vmatmul.mubr.msk.bf16.vlgmr.msra.gmra.mrb[8].mxu1 %vm1402_vm3, %v5918_v58 }
 0x233   : > { %3858 = vmatpush3.bf16.msra.mxu1 %v4097_v48  ;;  %3853 = vmatprep.mubr.msk.bf16.mxu1 %vm1402_vm3, %v5921_v12  ;;  %v4125_v48 = vld [vmem:[%s5745_s14 + $0x24] ss:$8 sps:$4 sm:$0xff]  }
 0x234   : > { %3859 = vmatprep.subr.bf16.mxu1 %v4098_v37 }
 0x237   : > { %3860 = vmatpush3.bf16.msra.mxu1 %v4098_v37 }
 0x238   : > { %3861 = vmatprep.subr.bf16.mxu1 %v4099_v47 }
 0x23a   : > { %3854 = vmatmul.mubr.msk.bf16.gmra.mrb[12].mxu1 %vm1402_vm3, %v2289_v60  ;;  %v5928_v60 = vld [vmem:[#allocation54_spill] sm:$0xff] }
 0x23b   : > { %3862 = vmatpush3.bf16.msra.mxu1 %v4099_v47  ;;  %3865 = vmatprep.mubr.msk.bf16.mxu1 %vm1402_vm3, %v2448_v11  ;;  %v5932_v11 = vpack.c.bf16 %v5930_v57, %v5931_v54  ;;  %v4123_v47 = vld [vmem:[%s5745_s14 + $0x20] ss:$8 sps:$4 sm:$0xff]   ;;  %v4144_v57 = vld [vmem:[%s5745_s14 + $0x90] ss:$8 sps:$4 sm:$0xff]   ;;  %v4146_v54 = vld [vmem:[%s5745_s14 + $0x94] ss:$8 sps:$4 sm:$0xff]  }
 0x23c   : > { %3863 = vmatprep.subr.bf16.mxu1 %v4100_v15 }
 0x23f   : > { %3864 = vmatpush3.bf16.msra.mxu1 %v4100_v15 }
 0x240   : > { %3873 = vmatprep.subr.bf16.mxu1 %v4101_v16 }
 0x242   : > { %3866 = vmatmul.mubr.msk.bf16.vlgmr.msra.gmra.mrb[8].mxu1 %vm1402_vm3, %v2449_v22  ;;  %v5927_v22 = vld [vmem:[#allocation55_spill] sm:$0xff] }
 0x243   : > { %3874 = vmatpush3.bf16.msra.mxu1 %v4101_v16  ;;  %3869 = vmatprep.mubr.msk.bf16.mxu1 %vm1402_vm3, %v5924_v23  ;;  %v5929_v1 = vpack.c.bf16 %v5927_v22, %v5928_v60  ;;  %v4126_v16 = vld [vmem:[%s5745_s14 + $0x30] ss:$8 sps:$4 sm:$0xff]   ;;  %v4140_v22 = vld [vmem:[%s5745_s14 + $0x74] ss:$8 sps:$4 sm:$0xff]   ;;  %v4143_v60 = vld [vmem:[%s5745_s14 + $0x84] ss:$8 sps:$4 sm:$0xff]  }
 0x244   : > { %3875 = vmatprep.subr.bf16.mxu1 %v4102_v24  ;;  %v4132_v23 = vld [vmem:[%s5745_s14 + $0x50] ss:$8 sps:$4 sm:$0xff]  }
 0x247   : > { %3876 = vmatpush3.bf16.msra.mxu1 %v4102_v24  ;;  %v4128_v24 = vld [vmem:[%s5745_s14 + $0x34] ss:$8 sps:$4 sm:$0xff]  }
 0x248   : > { %3877 = vmatprep.subr.bf16.mxu1 %v4103_v14 }
 0x24a   : > { %3870 = vmatmul.mubr.msk.bf16.gmra.mrb[12].mxu1 %vm1402_vm3, %v5925_v59  ;;  %v4135_v59 = vld [vmem:[%s5745_s14 + $0x60] ss:$8 sps:$4 sm:$0xff]  }
 0x24b   : > { %3878 = vmatpush3.bf16.msra.mxu1 %v4103_v14  ;;  %3881 = vmatprep.mubr.msk.bf16.mxu1 %vm1402_vm3, %v2610_v61  ;;  %v4114_v61 = vld [vmem:[%s5742_s11 + $0x30] ss:$8 sps:$4 sm:$0xff]   ;;  %v4134_v14 = vld [vmem:[%s5745_s14 + $0x54] ss:$8 sps:$4 sm:$0xff]  }
 0x24c   : > { %3879 = vmatprep.subr.bf16.mxu1 %v4104_v31  ;;  %2841 = vmatpush1.bf16.msra.mxu0 %v4114_v61  ;;  %v4155_v61 = vld [vmem:[%s5745_s14 + $0xc4] ss:$8 sps:$4 sm:$0xff]  }
 0x24d   : > { %3215 = vmatprep.subr.bf16.mxu0 %v4119_v45  ;;  %v4153_v45 = vld [vmem:[%s5745_s14 + $0xc0] ss:$8 sps:$4 sm:$0xff]  }
 0x24f   : > { %3880 = vmatpush3.bf16.msra.mxu1 %v4104_v31  ;;  %v4137_v31 = vld [vmem:[%s5745_s14 + $0x64] ss:$8 sps:$4 sm:$0xff]  }
 0x252   : > { %3882 = vmatmul.mubr.msk.bf16.vlgmr.msra.gmra.mrb[8].mxu1 %vm1402_vm3, %v5926_v13  ;;  %v4138_v13 = vld [vmem:[%s5745_s14 + $0x70] ss:$8 sps:$4 sm:$0xff]  }
 0x253   : > { %3885 = vmatprep.mubr.msk.bf16.mxu1 %vm1402_vm3, %v5929_v1  ;;  %v4141_v1 = vld [vmem:[%s5745_s14 + $0x80] ss:$8 sps:$4 sm:$0xff]  }
 0x25a   : > { %3886 = vmatmul.mubr.msk.bf16.gmra.mrb[12].mxu1 %vm1402_vm3, %v5932_v11  ;;  %v4149_v11 = vld [vmem:[%s5745_s14 + $0xa4] ss:$8 sps:$4 sm:$0xff]  }
 0x325   : > { %v3883_v33 = vpop.f32.mrb[8].mxu1 }
 0x326   : > { %v2741_v34 = vmul.f32 %v3883_v33, %v3584_v6  ;;  %v2693_v35 = vpop.f32.mrb[9].mxu1  ;;  %v4156_v33 = vld [vmem:[%s5745_s14 + $0xd0] ss:$8 sps:$4 sm:$0xff]  }
 0x327   : > { %v2739_v41 = vmul.f32 %v3584_v6, %v2693_v35  ;;  %v3884_v8 = vpop.f32.mrb[10].mxu1  ;;  %v4164_v35 = vld [vmem:[%s5745_s14 + $0xf4] ss:$8 sps:$4 sm:$0xff]  }
 0x328   : > { %v2756_v49 = vadd.f32 %v3585_v62, %v2741_v34  ;;  %v2742_v52 = vmul.f32 %v3884_v8, %v3584_v6  ;;  %v2696_v63 = vpop.f32.mrb[11].mxu1  ;;  %v4159_v34 = vld [vmem:[%s5745_s14 + $0xe0] ss:$8 sps:$4 sm:$0xff]  }
 0x329   : > { %v2754_v29 = vadd.f32 %v3585_v62, %v2739_v41  ;;  %v2740_v10 = vmul.f32 %v3584_v6, %v2696_v63  ;;  %v4162_v41 = vld [vmem:[%s5745_s14 + $0xf0] ss:$8 sps:$4 sm:$0xff]   ;;  %v2907_v8 = vld [vmem:[%s5743_s12] sm:$0x3] }
 0x32a   : > { %v2757_v21 = vadd.f32 %v3585_v62, %v2742_v52  ;;  %v2764_v26 = vmax.f32 %v2756_v49, 0.0  ;;  %v5934_v49 = vld [vmem:[#allocation48_spill] sm:$0xff] }
 0x32b   : > { %v2755_v2 = vadd.f32 %v3585_v62, %v2740_v10  ;;  %v2762_v51 = vmax.f32 %v2754_v29, 0.0  ;;  %v5647_v52 = vrot.slane %v2907_v8, %v5934_v49  ;;  %v2935_v29 = vld [vmem:[%s5744_s13] sm:$0x3]  ;;  %v5935_v10 = vld [vmem:[#allocation49_spill] sm:$0xff] }
 0x32c   : > { %v2765_v28 = vmax.f32 %v2757_v21, 0.0  ;;  %v5653_v21 = vrot.slane %v2907_v8, %v5935_v10 }
 0x32d   : > { %v2763_v18 = vmax.f32 %v2755_v2, 0.0  ;;  %v3887_v40 = vpop.f32.mrb[12].mxu1 }
 0x32e   : > { %v2771_v7 = vpack.c.bf16 %v2765_v28, %v2764_v26  ;;  %v2745_v3 = vmul.f32 %v3887_v40, %v3584_v6  ;;  %v2709_v46 = vpop.f32.mrb[13].mxu1 }
 0x32f   : > { %v2770_v32 = vpack.c.bf16 %v2763_v18, %v2762_v51  ;;  %v2743_v43 = vmul.f32 %v3584_v6, %v2709_v46  ;;  %v3888_v17 = vpop.f32.mrb[14].mxu1  ;;  %v5657_v51 = vrot.slane %v2935_v29, %v5934_v49 }
 0x330   : > { %v2760_v39 = vadd.f32 %v3585_v62, %v2745_v3  ;;  %v2746_v53 = vmul.f32 %v3888_v17, %v3584_v6  ;;  %v2712_v9 = vpop.f32.mrb[15].mxu1 }
 0x331   : > { %v2758_v20 = vadd.f32 %v3585_v62, %v2743_v43  ;;  %v2744_v25 = vmul.f32 %v3584_v6, %v2712_v9  ;;  %3594 = vmatmul.mubr.msk.bf16.vlgmr.msra.gmra.mrb[12].mxu0 %vm1402_vm3, %v2770_v32  ;;  %v4158_v6 = vld [vmem:[%s5745_s14 + $0xd4] ss:$8 sps:$4 sm:$0xff]  }
 0x332   : > { %v2761_v36 = vadd.f32 %v3585_v62, %v2746_v53  ;;  %2876 = vmatprep.mubr.bf16.mxu0 %v5933_v38  ;;  %3216 = vmatpush1.bf16.msra.mxu0 %v4117_v55  ;;  %v2768_v37 = vmax.f32 %v2760_v39, 0.0 }
 0x333   : > { %v2759_v56 = vadd.f32 %v3585_v62, %v2744_v25  ;;  %3217 = vmatprep.subr.bf16.mxu0 %v4122_v27  ;;  %v2766_v0 = vmax.f32 %v2758_v20, 0.0  ;;  %v4161_v62 = vld [vmem:[%s5745_s14 + $0xe4] ss:$8 sps:$4 sm:$0xff]  }
 0x334   : > { %v2769_v58 = vmax.f32 %v2761_v36, 0.0  ;;  %v5936_v25 = vld [vmem:[#allocation3_spill] sm:$0xff] }
 0x335   : > { %v2767_v50 = vmax.f32 %v2759_v56, 0.0 }
 0x336   : > { %v2773_v12 = vpack.c.bf16 %v2769_v58, %v2768_v37  ;;  %3218 = vmatpush1.bf16.msra.mxu0 %v4120_v42 }
 0x337   : > { %v2772_v15 = vpack.c.bf16 %v2767_v50, %v2766_v0  ;;  %3219 = vmatprep.subr.bf16.mxu0 %v4125_v48  ;;  %v5937_v48 = vld [vmem:[#allocation2_spill] sm:$0xff]  ;;  %v5938_v50 = vld [vmem:[#allocation5_spill] sm:$0xff] }
 0x339   : > { %3595 = vmatmul.mubr.msk.bf16.gmra.mrb[16].mxu0 %vm1402_vm3, %v2771_v7  ;;  %v5661_v7 = vrot.slane %v2935_v29, %v5935_v10 }
 0x33a   : > { %2886 = vmatprep.mubr.bf16.mxu0 %v5933_v38  ;;  %3220 = vmatpush1.bf16.msra.mxu0 %v4123_v47  ;;  %v5939_v47 = vld [vmem:[#allocation7_spill] sm:$0xff] }
 0x33b   : > { %3221 = vmatprep.subr.bf16.mxu0 %v4128_v24  ;;  %v5940_v24 = vld [vmem:[#allocation4_spill] sm:$0xff] }
 0x33e   : > { %3222 = vmatpush1.bf16.msra.mxu0 %v4126_v16 }
 0x33f   : > { %3223 = vmatprep.subr.bf16.mxu0 %v4131_v44 }
 0x341   : > { %3596 = vmatmul.mubr.msk.bf16.gmra.mrb[20].mxu0 %vm1402_vm3, %v2772_v15 }
 0x342   : > { %2896 = vmatprep.mubr.bf16.mxu0 %v5933_v38  ;;  %3224 = vmatpush1.bf16.msra.mxu0 %v4129_v5  ;;  %v5941_v5 = vld [vmem:[#allocation6_spill] sm:$0xff] }
 0x343   : > { %3225 = vmatprep.subr.bf16.mxu0 %v4134_v14 }
 0x346   : > { %3226 = vmatpush1.bf16.msra.mxu0 %v4132_v23 }
 0x347   : > { %3227 = vmatprep.subr.bf16.mxu0 %v4137_v31 }
 0x349   : > { %3597 = vmatmul.mubr.msk.bf16.gmra.mrb[24].mxu0 %vm1402_vm3, %v2773_v12 }
 0x34a   : > { %3228 = vmatpush1.bf16.msra.mxu0 %v4135_v59 }
 0x34b   : > { %3229 = vmatprep.subr.bf16.mxu0 %v4140_v22 }
 0x34e   : > { %3230 = vmatpush1.bf16.msra.mxu0 %v4138_v13  ;;  %v5942_v13 = vld [vmem:[#allocation9_spill] sm:$0xff] }
 0x34f   : > { %3231 = vmatprep.subr.bf16.mxu0 %v4143_v60 }
 0x352   : > { %3232 = vmatpush1.bf16.msra.mxu0 %v4141_v1 }
 0x353   : > { %3233 = vmatprep.subr.bf16.mxu0 %v4146_v54 }
 0x356   : > { %3234 = vmatpush1.bf16.msra.mxu0 %v4144_v57  ;;  %v5943_v57 = vld [vmem:[#allocation8_spill] sm:$0xff] }
 0x357   : > { %3235 = vmatprep.subr.bf16.mxu0 %v4149_v11 }
 0x35a   : > { %3236 = vmatpush1.bf16.msra.mxu0 %v4147_v30 }
 0x35b   : > { %3237 = vmatprep.subr.bf16.mxu0 %v4152_v4 }
 0x35e   : > { %3238 = vmatpush1.bf16.msra.mxu0 %v4150_v19 }
 0x35f   : > { %3239 = vmatprep.subr.bf16.mxu0 %v4155_v61 }
 0x362   : > { %3240 = vmatpush1.bf16.msra.mxu0 %v4153_v45 }
 0x363   : > { %3241 = vmatprep.subr.bf16.mxu0 %v4158_v6 }
 0x366   : > { %3242 = vmatpush1.bf16.msra.mxu0 %v4156_v33 }
 0x367   : > { %3243 = vmatprep.subr.bf16.mxu0 %v4161_v62 }
 0x36a   : > { %3244 = vmatpush1.bf16.msra.mxu0 %v4159_v34 }
 0x36b   : > { %3245 = vmatprep.subr.bf16.mxu0 %v4164_v35 }
 0x36e   : > { %3246 = vmatpush1.bf16.msra.mxu0 %v4162_v41 }
 0x404   : > { %v2868_v63 = vpop.f32.mrb[12].mxu0 }
 0x405   : > { %v2870_v2 = vpop.f32.mrb[13].mxu0  ;;  %v2919_v28 = vmul.f32 %v5647_v52, %v2868_v63 }
 0x406   : > { %v2872_v26 = vpop.f32.mrb[14].mxu0  ;;  %v2920_v40 = vmul.f32 %v5653_v21, %v2870_v2 }
 0x407   : > { %v2874_v18 = vpop.f32.mrb[15].mxu0  ;;  %v2921_v3 = vmul.f32 %v5647_v52, %v2872_v26  ;;  %v2947_v55 = vadd.f32 %v5657_v51, %v2919_v28 }
 0x408   : > { %v2922_v46 = vmul.f32 %v5653_v21, %v2874_v18  ;;  %v2948_v32 = vadd.f32 %v5661_v7, %v2920_v40  ;;  %v5944_v18 = vld [vmem:[#allocation11_spill] sm:$0xff] }
 0x409   : > { %v2949_v17 = vadd.f32 %v5657_v51, %v2921_v3  ;;  %v2963_v36 = vadd.f32 %v2947_v55, %v5936_v25 }
 0x40a   : > { %v2950_v53 = vadd.f32 %v5661_v7, %v2922_v46  ;;  %v2964_v37 = vadd.f32 %v2948_v32, %v5937_v48  ;;  %v5945_v46 = vld [vmem:[#allocation10_spill] sm:$0xff] }
 0x40b   : > { %v2965_v12 = vadd.f32 %v2949_v17, %v5938_v50  ;;  %v2979_v31 = vmax.f32 %v2963_v36, 0.0  ;;  %v5946_v17 = vld [vmem:[#allocation13_spill] sm:$0xff] }
 0x40c   : > { %v2878_v43 = vpop.f32.mrb[16].mxu0  ;;  %v2966_v44 = vadd.f32 %v2950_v53, %v5940_v24  ;;  %v2980_v60 = vmax.f32 %v2964_v37, 0.0  ;;  %v5947_v53 = vld [vmem:[#allocation12_spill] sm:$0xff] }
 0x40d   : > { %v2923_v27 = vmul.f32 %v5647_v52, %v2878_v43  ;;  %v2880_v39 = vpop.f32.mrb[17].mxu0  ;;  %v2981_v30 = vmax.f32 %v2965_v12, 0.0 }
 0x40e   : > { %v2924_v9 = vmul.f32 %v5653_v21, %v2880_v39  ;;  %v2882_v20 = vpop.f32.mrb[18].mxu0  ;;  %v2982_v6 = vmax.f32 %v2966_v44, 0.0  ;;  %v5948_v44 = vld [vmem:[#allocation15_spill] sm:$0xff] }
 0x40f   : > { %v2951_v38 = vadd.f32 %v5657_v51, %v2923_v27  ;;  %v2925_v42 = vmul.f32 %v5647_v52, %v2882_v20  ;;  %v2884_v56 = vpop.f32.mrb[19].mxu0 }
 0x410   : > { %v2952_v58 = vadd.f32 %v5661_v7, %v2924_v9  ;;  %v2926_v0 = vmul.f32 %v5653_v21, %v2884_v56 }
 0x411   : > { %v2967_v15 = vadd.f32 %v2951_v38, %v5939_v47  ;;  %v2953_v16 = vadd.f32 %v5657_v51, %v2925_v42 }
 0x412   : > { %v2968_v23 = vadd.f32 %v2952_v58, %v5941_v5  ;;  %v2954_v14 = vadd.f32 %v5661_v7, %v2926_v0 }
 0x413   : > { %v2983_v59 = vmax.f32 %v2967_v15, 0.0  ;;  %v2969_v22 = vadd.f32 %v2953_v16, %v5942_v13 }
 0x414   : > { %v2984_v1 = vmax.f32 %v2968_v23, 0.0  ;;  %v2970_v54 = vadd.f32 %v2954_v14, %v5943_v57  ;;  %v2888_v11 = vpop.f32.mrb[20].mxu0  ;;  %v5949_v14 = vld [vmem:[#allocation14_spill] sm:$0xff]  ;;  %v5951_v57 = vld [vmem:[#allocation16_spill] sm:$0xff] }
 0x415   : > { %v2995_v4 = vmax.f32 %v2979_v31, %v2983_v59  ;;  %v2985_v19 = vmax.f32 %v2969_v22, 0.0  ;;  %v2927_v61 = vmul.f32 %v5647_v52, %v2888_v11  ;;  %v2890_v45 = vpop.f32.mrb[21].mxu0  ;;  %v5950_v22 = vld [vmem:[#allocation17_spill] sm:$0xff] }
 0x416   : > { %v3008_v33 = vmax.f32 %v2980_v60, %v2984_v1  ;;  %v2986_v62 = vmax.f32 %v2970_v54, 0.0  ;;  %v2928_v34 = vmul.f32 %v5653_v21, %v2890_v45  ;;  %v2892_v35 = vpop.f32.mrb[22].mxu0 }
 0x417   : > { %v2996_v41 = vmax.f32 %v2981_v30, %v2985_v19  ;;  %v2955_v8 = vadd.f32 %v5657_v51, %v2927_v61  ;;  %v2929_v63 = vmul.f32 %v5647_v52, %v2892_v35  ;;  %v2894_v29 = vpop.f32.mrb[23].mxu0 }
 0x418   : > { %v3009_v2 = vmax.f32 %v2982_v6, %v2986_v62  ;;  %v2956_v26 = vadd.f32 %v5661_v7, %v2928_v34  ;;  %v2930_v28 = vmul.f32 %v5653_v21, %v2894_v29 }
 0x419   : > { %v2971_v40 = vadd.f32 %v2955_v8, %v5944_v18  ;;  %v2957_v3 = vadd.f32 %v5657_v51, %v2929_v63  ;;  %v3256_v18 = vld [vmem:[%s5746_s15] sm:$0x3] }
 0x41a   : > { %v2972_v55 = vadd.f32 %v2956_v26, %v5945_v46  ;;  %v2958_v32 = vadd.f32 %v5661_v7, %v2930_v28  ;;  %v3265_v46 = vrot.slane %v3256_v18, %v5935_v10 }
 0x41b   : > { %v2987_v43 = vmax.f32 %v2971_v40, 0.0  ;;  %v2973_v27 = vadd.f32 %v2957_v3, %v5946_v17  ;;  %v3270_v40 = vld [vmem:[%s5747_s16] sm:$0x3]  ;;  %v3261_v3 = vrot.slane %v3256_v18, %v5934_v49 }
 0x41c   : > { %v2988_v39 = vmax.f32 %v2972_v55, 0.0  ;;  %v2974_v9 = vadd.f32 %v2958_v32, %v5947_v53  ;;  %v2898_v20 = vpop.f32.mrb[24].mxu0  ;;  %v3275_v55 = vrot.slane %v3270_v40, %v5934_v49 }
 0x41d   : > { %v2997_v25 = vmax.f32 %v2995_v4, %v2987_v43  ;;  %v2989_v36 = vmax.f32 %v2973_v27, 0.0  ;;  %v2931_v38 = vmul.f32 %v5647_v52, %v2898_v20  ;;  %v2900_v42 = vpop.f32.mrb[25].mxu0  ;;  %v3279_v43 = vrot.slane %v3270_v40, %v5935_v10 }
 0x41e   : > { %v3010_v56 = vmax.f32 %v3008_v33, %v2988_v39  ;;  %v2990_v48 = vmax.f32 %v2974_v9, 0.0  ;;  %v2932_v37 = vmul.f32 %v5653_v21, %v2900_v42  ;;  %v2902_v58 = vpop.f32.mrb[26].mxu0 }
 0x41f   : > { %v2998_v0 = vmax.f32 %v2996_v41, %v2989_v36  ;;  %v2959_v50 = vadd.f32 %v5657_v51, %v2931_v38  ;;  %v2933_v12 = vmul.f32 %v5647_v52, %v2902_v58  ;;  %v2904_v47 = vpop.f32.mrb[27].mxu0 }
 0x420   : > { %v3011_v15 = vmax.f32 %v3009_v2, %v2990_v48  ;;  %v2960_v16 = vadd.f32 %v5661_v7, %v2932_v37  ;;  %v2934_v24 = vmul.f32 %v5653_v21, %v2904_v47 }
 0x421   : > { %v2975_v5 = vadd.f32 %v2959_v50, %v5948_v44  ;;  %v2961_v23 = vadd.f32 %v5657_v51, %v2933_v12 }
 0x422   : > { %v2976_v31 = vadd.f32 %v2960_v16, %v5949_v14  ;;  %v2962_v59 = vadd.f32 %v5661_v7, %v2934_v24 }
 0x423   : > { %v2991_v13 = vmax.f32 %v2975_v5, 0.0  ;;  %v2977_v60 = vadd.f32 %v2961_v23, %v5950_v22 }
 0x424   : > { %v2992_v1 = vmax.f32 %v2976_v31, 0.0  ;;  %v2978_v52 = vadd.f32 %v2962_v59, %v5951_v57 }
 0x425   : > { %v2999_v54 = vmax.f32 %v2997_v25, %v2991_v13  ;;  %v2993_v11 = vmax.f32 %v2977_v60, 0.0 }
 0x426   : > { %v3012_v30 = vmax.f32 %v3010_v56, %v2992_v1  ;;  %v2994_v4 = vmax.f32 %v2978_v52, 0.0  ;;  %v5952_v56 = vld [vmem:[#allocation58_spill] sm:$0xff] }
 0x427   : > { %v3000_v19 = vmax.f32 %v2998_v0, %v2993_v11 }
 0x428   : > { %v3013_v21 = vmax.f32 %v3011_v15, %v2994_v4 }
 0x429   : > { %v3001_v61 = vmax.f32 %v2999_v54, %v3000_v19 }
 0x42a   : > { %v3014_v45 = vmax.f32 %v3012_v30, %v3013_v21 }
 0x42b   : > { %v3002_v6 = vrot.slane %v3001_v61, 4 }
 0x42c   : > { %v3015_v51 = vrot.slane %v3014_v45, 4 }
 0x42d   : > { %v3003_v33 = vmax.f32 %v3001_v61, %v3002_v6 }
 0x42e   : > { %v3016_v62 = vmax.f32 %v3014_v45, %v3015_v51 }
 0x42f   : > { %v3004_v34 = vrot.slane %v3003_v33, 2 }
 0x430   : > { %v3017_v7 = vrot.slane %v3016_v62, 2 }
 0x431   : > { %v3005_v35 = vmax.f32 %v3003_v33, %v3004_v34 }
 0x432   : > { %v3018_v41 = vmax.f32 %v3016_v62, %v3017_v7 }
 0x433   : > { %v3006_v8 = vrot.slane %v3005_v35, 1 }
 0x434   : > { %v3019_v63 = vrot.slane %v3018_v41, 1 }
 0x435   : > { %v3007_v29 = vmax.f32 %v3005_v35, %v3006_v8 }
 0x436   : > { %v3020_v2 = vmax.f32 %v3018_v41, %v3019_v63 }
 0x437   : > { %v3021_v28 = vpack.c.bf16 %v3007_v29, %v3007_v29 }
 0x438   : > { %v3022_v26 = vpack.c.bf16 %v3020_v2, %v3020_v2 }
 0x43a   : > { %3247 = vmatprep.mubr.bf16.mxu0 %v3022_v26 }
 0x43b   : > { %3248 = vmatmul.mubr.bf16.vlgmr.msra.gmra.mrb[28].mxu0 %v3021_v28 }
 0x50e   : > { %v3249_v32 = vpop.f32.mrb[28].mxu0 }
 0x50f   : > { %v3268_v17 = vmul.f32 %v3261_v3, %v3249_v32  ;;  %v3251_v27 = vpop.f32.mrb[29].mxu0 }
 0x510   : > { %v3269_v39 = vmul.f32 %v3265_v46, %v3251_v27  ;;  %v3253_v53 = vpop.f32.mrb[30].mxu0 }
 0x511   : > { %v3282_v9 = vadd.f32 %v3275_v55, %v3268_v17  ;;  %v3254_v20 = vpop.f32.mrb[31].mxu0 }
 0x512   : > { %v3283_v25 = vadd.f32 %v3279_v43, %v3269_v39 }
 0x513   : > { %v3284_v36 = vmax.f32 %v3282_v9, 0.0 }
 0x514   : > { %v3285_v38 = vmax.f32 %v3283_v25, 0.0 }
 0x516   : > { %v3288_v42 = vcombine.low %v3284_v36, %v3285_v38 }
 0x518   : > { %v3295_v48 = vrot.slane %v3288_v42, %v5952_v56 }
 0x51a   : > { %v3302_v49 = vrot.slane %v3295_v48, %v5952_v56 }
 0x51c   : > { %3304 = vst.msk [vmem:[%s584_s25] sm:$0x3] %vm5029_vm2, %v3302_v49 }
 0x51d PF: > { %s29_s27 = sadd.s32 1, %s4171_s27  }
 0x51e   : > { %p26_p4 = scmp.ge.s32.totalorder %s29_s27, 4  }
 0x520   :  { %28 = sbr.rel (!%p26_p4) target bundleno = 4 (0x4), region = 138 }

</bundles_post_ra>
